<compile_context>
chip_gen: v7x
topology: tpu7x:2x2x1
jax: 0.10.0
libtpu: 0.0.40
codegen_flags: <defaults>
</compile_context>

<pallas_src>
import functools

import jax
import jax.numpy as jnp
import numpy as np
from jax.experimental import pallas as pl
from jax.experimental.pallas import tpu as pltpu

# keep the pure-JAX reference numerically tight so the f32 correctness check is meaningful
jax.config.update("jax_default_matmul_precision", "highest")

ATTEN_SIZE = 2        # see note above (source global is 0, a degenerate/crashing path in torch)
HIDDEN_SIZE = 64
OUTPUT_SIZE = 2
NEG_INF = -1e30       # large-but-finite so exp() underflows to exactly 0 (no inf/NaN paths)


# ---------------------------------------------------------------------------
# Pallas kernel: one grid step processes `block_b` batches as a (M, D) slab,
# M = block_b * S.  Attention stays per-batch via block-diagonal constants.
# ---------------------------------------------------------------------------
def _mlp_rest_self_atten_kernel(x_ref, band_ref, qkmask_ref, w1_ref, b1_ref,
                                wqk_ref, wv_ref, w2_ref, b2_ref,
                                logits_ref, attn_ref, *,
                                compute_dtype, inv_sqrt_hidden):
    cd = compute_dtype                    # MXU compute dtype (bf16 default, f32 for checks)

    # ---- layer1 + ReLU: one (M, D_in) x (D_in, H) MXU dot, f32 accumulate ----
    x_cd = x_ref[...].astype(cd)                                              # in-kernel cast
    h = jnp.dot(x_cd, w1_ref[...], preferred_element_type=jnp.float32)
    h = jnp.maximum(h + b1_ref[...], 0.0)                                     # (M, H) f32
    h_cd = h.astype(cd)                                                       # hoisted, reused

    # ---- restricted-attention neighbour sum ----
    # band is a constant block-diagonal banded 0/1 matrix (resident in VMEM):
    # nei[t] = sum_{|d|<=atten_size, same batch} h[t + d]  (zero-padded at edges).
    # Downstream contractions are linear in the window axis, so this is exact.
    nei = jnp.dot(band_ref[...], h_cd, preferred_element_type=jnp.float32)    # (M, H) f32
    nei_cd = nei.astype(cd)

    # ---- scores: qk = (h @ Wq)(nei @ Wk)^T == (h @ (Wq Wk^T)) . nei^T -------
    # W_qk = Wq @ Wk^T is precomputed (f32) on the host; keys are never materialized
    # and there is no intra-tile lane split.
    t = jnp.dot(h_cd, wqk_ref[...], preferred_element_type=jnp.float32)       # (M, H) f32
    qk = jax.lax.dot_general(t.astype(cd), nei_cd,
                             dimension_numbers=(((1,), (1,)), ((), ())),
                             preferred_element_type=jnp.float32)              # (M, M) f32
    # block-diagonal additive mask: keys of other batches in this slab get -1e30 (f32 add,
    # applied AFTER f32 accumulation -> exact cross-batch isolation via exp underflow)
    qk = qk + qkmask_ref[...]

    # ---- softmax over the key axis, fused with the 1/sqrt(H) post-scale (torch order) ----
    m = jnp.max(qk, axis=-1, keepdims=True)
    e = jnp.exp(qk - m)
    denom = jnp.sum(e, axis=-1, keepdims=True)
    attn = e * (pl.reciprocal(denom, approx=False) * inv_sqrt_hidden)         # (M, M) f32

    # Lane-dense store of the whole slab (off-batch entries are exactly zero); the wrapper
    # extracts the per-batch (S, S) diagonal blocks.
    attn_ref[0] = attn.astype(attn_ref.dtype)

    # ---- values + context: contract the query-row axis (axis 0) of attn, per the torch einsum ----
    vals = jnp.dot(nei_cd, wv_ref[...], preferred_element_type=jnp.float32)   # (M, H) f32
    ctx = jax.lax.dot_general(attn.astype(cd), vals.astype(cd),
                              dimension_numbers=(((0,), (0,)), ((), ())),
                              preferred_element_type=jnp.float32)             # (M, H) f32

    # ---- layer2, computed transposed so the store is lane-dense: (O, M), N-dim = M ----
    logits_t = jax.lax.dot_general(w2_ref[...], ctx.astype(cd),
                                   dimension_numbers=(((0,), (1,)), ((), ())),
                                   preferred_element_type=jnp.float32)        # (O, M) f32
    logits_ref[0] = (logits_t + b2_ref[...]).astype(logits_ref.dtype)


def _pick_block_batches(batch, seq, *, row_target=128, row_cap=256):
    """Batches folded per grid step.  Priority: (1) minimal batch padding, (2) >=2 grid steps
    with M = block_b*seq >= 64 (v7x has 2 TensorCores), (3) M closest to ~row_target for MXU
    fill.  M is capped so the resident (M,M) constants / attn slab stay tiny in VMEM."""
    if seq % 8 != 0:
        return batch                      # single step -> blocks equal full arrays
    if seq >= row_cap:
        return 1
    best_bb, best_key = batch, None
    for bb in range(1, batch + 1):
        m = bb * seq
        if m > row_cap:
            break
        nb = pl.cdiv(batch, bb)
        pad = nb * bb - batch
        key = (pad, 0 if (nb >= 2 and m >= 64) else 1, abs(m - row_target))
        if best_key is None or key < best_key:
            best_key, best_bb = key, bb
    return best_bb


def ex_l_rest_self_atten(x, w1, b1, wq, wk, wv, w2, b2, *,
                         atten_size=ATTEN_SIZE, compute_dtype=jnp.bfloat16):
    """Pallas forward.  Returns (logits (B,S,O), atten_weights (B,S,S)), both float32."""
    B, S, D_in = x.shape
    H = w1.shape[1]
    O = w2.shape[1]

    block_b = _pick_block_batches(B, S)
    n_blocks = pl.cdiv(B, block_b)
    B_pad = n_blocks * block_b
    if B_pad != B:
        x = jnp.pad(x, ((0, B_pad - B), (0, 0), (0, 0)))
    M = block_b * S                       # rows per grid step (MXU M dimension)

    cd = compute_dtype
    # Batch folded into the row axis; stays f32 — the bf16 cast happens inside the kernel.
    x_rows = x.reshape(B_pad * S, D_in)

    # Host-side W_q / W_k fusion (f32, 'highest' precision): W_qk = Wq @ Wk^T.
    wqk = jnp.matmul(jnp.asarray(wq, jnp.float32),
                     jnp.asarray(wk, jnp.float32).T).astype(cd)               # (H, H)
    w1c = jnp.asarray(w1, cd)
    wvc = jnp.asarray(wv, cd)
    w2c = jnp.asarray(w2, cd)
    b1f = jnp.asarray(b1, jnp.float32).reshape(1, H)   # biases added after f32 accumulate
    b2f = jnp.asarray(b2, jnp.float32).reshape(O, 1)   # broadcast over the transposed logits

    # Per-slab constants (host-built once, resident in VMEM; no per-step iota work):
    #  * band:   block-diagonal banded 0/1 matrix -> nei = band @ h
    #  * qkmask: additive -1e30 mask so the softmax never mixes batches in the slab
    rows = np.arange(M)
    same = (rows[:, None] // S) == (rows[None, :] // S)
    near = np.abs(rows[:, None] - rows[None, :]) <= atten_size
    band = jnp.asarray((same & near).astype(np.float32), dtype=cd)
    qkmask = jnp.asarray(np.where(same, 0.0, NEG_INF).astype(np.float32))

    kernel = functools.partial(
        _mlp_rest_self_atten_kernel,
        compute_dtype=cd,
        inv_sqrt_hidden=float(1.0 / np.sqrt(float(H))),
    )

    # Small weights / constants revisited every step: resident in VMEM, no double buffering.
    resident = pl.BlockSpec(memory_space=pltpu.MemorySpace.VMEM)

    grid_spec = pltpu.PrefetchScalarGridSpec(
        num_scalar_prefetch=0,
        grid=(n_blocks,),
        in_specs=[
            pl.BlockSpec((M, D_in), lambda i: (i, 0)),            # x rows for this slab
            resident, resident,                                   # band, qkmask
            resident, resident, resident, resident, resident, resident,  # weights / biases
        ],
        out_specs=(
            pl.BlockSpec((1, O, M), lambda i: (i, 0, 0)),         # transposed logits (lane = M)
            pl.BlockSpec((1, M, M), lambda i: (i, 0, 0)),         # full attention slab (lane = M)
        ),
    )
    out_shape = (
        jax.ShapeDtypeStruct((n_blocks, O, M), jnp.float32),
        jax.ShapeDtypeStruct((n_blocks, M, M), jnp.float32),
    )
    logits3, attn_slab = pl.pallas_call(
        kernel,
        grid_spec=grid_spec,
        out_shape=out_shape,
        compiler_params=pltpu.CompilerParams(dimension_semantics=("parallel",)),
    )(x_rows, band, qkmask, w1c, b1f, wqk, wvc, w2c, b2f)

    # Wrapper-side layout plumbing (cheap XLA ops):
    #  * un-transpose the logits back to (B, S, O)
    #  * extract the per-batch (S, S) diagonal blocks of each (M, M) attention slab
    logits = jnp.transpose(logits3, (0, 2, 1)).reshape(B_pad, S, O)[:B]
    attn5 = attn_slab.reshape(n_blocks, block_b, S, block_b, S)
    attn_diag = jnp.diagonal(attn5, axis1=1, axis2=3)             # (n_blocks, S, S, block_b)
    attn = jnp.moveaxis(attn_diag, -1, 1).reshape(B_pad, S, S)[:B]
    return logits, attn


# ---------------------------------------------------------------------------
# Pure-JAX reference that mirrors the torch forward literally (for validation).
# ---------------------------------------------------------------------------
def reference_forward(x, w1, b1, wq, wk, wv, w2, b2, *, atten_size=ATTEN_SIZE):
    H = w1.shape[1]
    h = jnp.maximum(jnp.matmul(x, w1) + b1.reshape(1, 1, -1), 0.0)            # (B,S,H)
    padded = jnp.pad(h, ((0, 0), (atten_size, atten_size), (0, 0)))
    x_nei = jnp.stack(
        [jnp.roll(padded, k_T, axis=1) for k_T in range(-atten_size, atten_size + 1)],
        axis=2,
    )
    x_nei = x_nei[:, atten_size:-atten_size, :]                               # (B,S,N,H)
    query = jnp.matmul(h, wq)                                                 # (B,S,H)
    keys = jnp.matmul(x_nei, wk)                                              # (B,S,N,H)
    values = jnp.matmul(x_nei, wv)                                            # (B,S,N,H)
    keys_T = jnp.swapaxes(keys, 1, 3)                                         # (B,H,N,S)
    qk = jnp.einsum('abc,acdf->abf', query, keys_T)                           # (B,S,S)
    attn = jax.nn.softmax(qk, axis=2) / np.sqrt(float(H))
    out = jnp.einsum('abcd,abf->afd', values, attn)                           # (B,S,H)
    out = jnp.matmul(out, w2) + b2.reshape(1, 1, -1)
    return out, attn


# ---------------------------------------------------------------------------
# Deterministic parameter init (xavier_normal matrices, zero biases).
# ---------------------------------------------------------------------------
def xavier_normal(key, shape):
    fan_in, fan_out = shape
    std = np.sqrt(2.0 / (fan_in + fan_out))
    return (std * jax.random.normal(key, shape)).astype(jnp.float32)


def init_params(key, input_size, hidden_size, output_size):
    ks = jax.random.split(key, 5)
    w1 = xavier_normal(ks[0], (input_size, hidden_size))
    b1 = jnp.zeros((1, hidden_size), jnp.float32)
    wq = xavier_normal(ks[1], (hidden_size, hidden_size))
    wk = xavier_normal(ks[2], (hidden_size, hidden_size))
    wv = xavier_normal(ks[3], (hidden_size, hidden_size))
    w2 = xavier_normal(ks[4], (hidden_size, output_size))
    b2 = jnp.zeros((1, output_size), jnp.float32)
    return w1, b1, wq, wk, wv, w2, b2


if __name__ == "__main__":
    # (2, 8, 32): toy shape (single grid step, M=16).
    # (20, 8, 32): exercises the multi-step grid (block_b=10 -> M=80, 2 steps, zero padding).
    for (B, S, D_IN) in [(2, 8, 32), (20, 8, 32)]:
        root = jax.random.PRNGKey(0)
        k_x, k_p = jax.random.split(root)
        x = jax.random.normal(k_x, (B, S, D_IN), jnp.float32)
        params = init_params(k_p, D_IN, HIDDEN_SIZE, OUTPUT_SIZE)

        ref_logits, ref_attn = reference_forward(x, *params)

        # 1) f32 MXU path: verifies the restructuring (batch folding, host Wq@Wk^T fusion,
        #    band/mask constants, transposed lane-dense outputs) is numerically faithful.
        logits32, attn32 = ex_l_rest_self_atten(x, *params, compute_dtype=jnp.float32)
        jax.block_until_ready((logits32, attn32))
        np.testing.assert_allclose(np.asarray(attn32), np.asarray(ref_attn),
                                   rtol=1e-3, atol=2e-4)
        np.testing.assert_allclose(np.asarray(logits32), np.asarray(ref_logits),
                                   rtol=1e-3, atol=2e-4)

        # 2) Default fast path: bf16 MXU operands (f32 accumulate, f32 softmax).
        #    Tolerances widened to bf16 operand precision.
        logits16, attn16 = ex_l_rest_self_atten(x, *params)
        jax.block_until_ready((logits16, attn16))
        np.testing.assert_allclose(np.asarray(attn16), np.asarray(ref_attn),
                                   rtol=1e-1, atol=2e-2)
        np.testing.assert_allclose(np.asarray(logits16), np.asarray(ref_logits),
                                   rtol=1e-1, atol=2e-2)

    print("KERNEL_OK")
</pallas_src>

<mosaic_0001>
module attributes {stable_mosaic.version = 11 : i64} {
  func.func @_mlp_rest_self_atten_kernel(%arg0: i32, %arg1: memref<16x32xf32, #tpu.memory_space<vmem>>, %arg2: memref<16x16xf32, #tpu.memory_space<vmem>>, %arg3: memref<16x16xf32, #tpu.memory_space<vmem>>, %arg4: memref<32x64xf32, #tpu.memory_space<vmem>>, %arg5: memref<1x64xf32, #tpu.memory_space<vmem>>, %arg6: memref<64x64xf32, #tpu.memory_space<vmem>>, %arg7: memref<64x64xf32, #tpu.memory_space<vmem>>, %arg8: memref<64x2xf32, #tpu.memory_space<vmem>>, %arg9: memref<2x1xf32, #tpu.memory_space<vmem>>, %arg10: memref<1x2x16xf32, #tpu.memory_space<vmem>>, %arg11: memref<1x16x16xf32, #tpu.memory_space<vmem>>) attributes {dimension_semantics = [#tpu.dimension_semantics<parallel>], iteration_bounds = array<i64: 1>, scalar_prefetch = 0 : i64, scratch_operands = 0 : i64, tpu.core_type = #tpu.core_type<tc>, window_params = [{transform_indices = @transform_0, window_bounds = array<i64: 16, 32>}, {pipeline_mode = #tpu.pipeline_mode<synchronous>, transform_indices = @transform_1, window_bounds = array<i64: 16, 16>}, {pipeline_mode = #tpu.pipeline_mode<synchronous>, transform_indices = @transform_2, window_bounds = array<i64: 16, 16>}, {pipeline_mode = #tpu.pipeline_mode<synchronous>, transform_indices = @transform_3, window_bounds = array<i64: 32, 64>}, {pipeline_mode = #tpu.pipeline_mode<synchronous>, transform_indices = @transform_4, window_bounds = array<i64: 1, 64>}, {pipeline_mode = #tpu.pipeline_mode<synchronous>, transform_indices = @transform_5, window_bounds = array<i64: 64, 64>}, {pipeline_mode = #tpu.pipeline_mode<synchronous>, transform_indices = @transform_6, window_bounds = array<i64: 64, 64>}, {pipeline_mode = #tpu.pipeline_mode<synchronous>, transform_indices = @transform_7, window_bounds = array<i64: 64, 2>}, {pipeline_mode = #tpu.pipeline_mode<synchronous>, transform_indices = @transform_8, window_bounds = array<i64: 2, 1>}, {transform_indices = @transform_9, window_bounds = array<i64: 1, 2, 16>}, {transform_indices = @transform_10, window_bounds = array<i64: 1, 16, 16>}]} {
    %c0 = arith.constant 0 : index
    %c0_0 = arith.constant 0 : index
    %0 = vector.load %arg1[%c0, %c0_0] : memref<16x32xf32, #tpu.memory_space<vmem>>, vector<16x32xf32>
    %c0_1 = arith.constant 0 : index
    %c0_2 = arith.constant 0 : index
    %1 = vector.load %arg4[%c0_1, %c0_2] : memref<32x64xf32, #tpu.memory_space<vmem>>, vector<32x64xf32>
    %cst = arith.constant dense<0.000000e+00> : vector<16x64xf32>
    %2 = tpu.matmul %0, %1, %cst {dimension_numbers = #tpu.dot_dimension_numbers<[1], [0], [0], [1], [0, 0, 1, 1], [], []>, precision = #tpu.contract_precision<fp32>} : vector<16x32xf32>, vector<32x64xf32>, vector<16x64xf32> -> vector<16x64xf32>
    %c0_3 = arith.constant 0 : index
    %c0_4 = arith.constant 0 : index
    %3 = vector.load %arg5[%c0_3, %c0_4] : memref<1x64xf32, #tpu.memory_space<vmem>>, vector<1x64xf32>
    %4 = vector.broadcast %3 : vector<1x64xf32> to vector<16x64xf32>
    %5 = arith.addf %2, %4 : vector<16x64xf32>
    %cst_5 = arith.constant 0.000000e+00 : f32
    %6 = vector.broadcast %cst_5 : f32 to vector<16x64xf32>
    %7 = arith.maximumf %5, %6 : vector<16x64xf32>
    %c0_6 = arith.constant 0 : index
    %c0_7 = arith.constant 0 : index
    %8 = vector.load %arg2[%c0_6, %c0_7] : memref<16x16xf32, #tpu.memory_space<vmem>>, vector<16x16xf32>
    %cst_8 = arith.constant dense<0.000000e+00> : vector<16x64xf32>
    %9 = tpu.matmul %8, %7, %cst_8 {dimension_numbers = #tpu.dot_dimension_numbers<[1], [0], [0], [1], [0, 0, 1, 1], [], []>, precision = #tpu.contract_precision<fp32>} : vector<16x16xf32>, vector<16x64xf32>, vector<16x64xf32> -> vector<16x64xf32>
    %c0_9 = arith.constant 0 : index
    %c0_10 = arith.constant 0 : index
    %10 = vector.load %arg6[%c0_9, %c0_10] : memref<64x64xf32, #tpu.memory_space<vmem>>, vector<64x64xf32>
    %cst_11 = arith.constant dense<0.000000e+00> : vector<16x64xf32>
    %11 = tpu.matmul %7, %10, %cst_11 {dimension_numbers = #tpu.dot_dimension_numbers<[1], [0], [0], [1], [0, 0, 1, 1], [], []>, precision = #tpu.contract_precision<fp32>} : vector<16x64xf32>, vector<64x64xf32>, vector<16x64xf32> -> vector<16x64xf32>
    %cst_12 = arith.constant dense<0.000000e+00> : vector<16x16xf32>
    %12 = tpu.matmul %11, %9, %cst_12 {dimension_numbers = #tpu.dot_dimension_numbers<[1], [1], [0], [0], [0, 0, 1, 0], [], []>, precision = #tpu.contract_precision<fp32>} : vector<16x64xf32>, vector<16x64xf32>, vector<16x16xf32> -> vector<16x16xf32>
    %c0_13 = arith.constant 0 : index
    %c0_14 = arith.constant 0 : index
    %13 = vector.load %arg3[%c0_13, %c0_14] : memref<16x16xf32, #tpu.memory_space<vmem>>, vector<16x16xf32>
    %14 = arith.addf %12, %13 : vector<16x16xf32>
    %cst_15 = arith.constant dense<0xFF800000> : vector<16xf32>
    %15 = vector.multi_reduction <maximumf>, %14, %cst_15 [1] : vector<16x16xf32> to vector<16xf32>
    %16 = vector.shape_cast %15 : vector<16xf32> to vector<16x1xf32>
    %17 = vector.broadcast %16 : vector<16x1xf32> to vector<16x16xf32>
    %18 = arith.subf %14, %17 : vector<16x16xf32>
    %19 = math.exp %18 : vector<16x16xf32>
    %cst_16 = arith.constant dense<0.000000e+00> : vector<16xf32>
    %20 = vector.multi_reduction <add>, %19, %cst_16 [1] : vector<16x16xf32> to vector<16xf32>
    %21 = vector.shape_cast %20 : vector<16xf32> to vector<16x1xf32>
    %22 = tpu.reciprocal %21 : vector<16x1xf32> -> vector<16x1xf32>
    %cst_17 = arith.constant 1.250000e-01 : f32
    %23 = vector.broadcast %cst_17 : f32 to vector<16x1xf32>
    %24 = arith.mulf %22, %23 : vector<16x1xf32>
    %25 = vector.broadcast %24 : vector<16x1xf32> to vector<16x16xf32>
    %26 = arith.mulf %19, %25 : vector<16x16xf32>
    %c0_18 = arith.constant 0 : index
    %c0_19 = arith.constant 0 : index
    %c0_20 = arith.constant 0 : index
    %27 = vector.load %arg11[%c0_18, %c0_19, %c0_20] : memref<1x16x16xf32, #tpu.memory_space<vmem>>, vector<1x16x16xf32>
    %28 = vector.shape_cast %27 : vector<1x16x16xf32> to vector<16x16xf32>
    %29 = vector.shape_cast %26 : vector<16x16xf32> to vector<1x16x16xf32>
    tpu.vector_store %arg11[%c0_18, %c0_19, %c0_20], %29 {strides = array<i32>} : memref<1x16x16xf32, #tpu.memory_space<vmem>>, vector<1x16x16xf32>,
    %c0_21 = arith.constant 0 : index
    %c0_22 = arith.constant 0 : index
    %30 = vector.load %arg7[%c0_21, %c0_22] : memref<64x64xf32, #tpu.memory_space<vmem>>, vector<64x64xf32>
    %cst_23 = arith.constant dense<0.000000e+00> : vector<16x64xf32>
    %31 = tpu.matmul %9, %30, %cst_23 {dimension_numbers = #tpu.dot_dimension_numbers<[1], [0], [0], [1], [0, 0, 1, 1], [], []>, precision = #tpu.contract_precision<fp32>} : vector<16x64xf32>, vector<64x64xf32>, vector<16x64xf32> -> vector<16x64xf32>
    %cst_24 = arith.constant dense<0.000000e+00> : vector<16x64xf32>
    %32 = tpu.matmul %26, %31, %cst_24 {dimension_numbers = #tpu.dot_dimension_numbers<[0], [0], [1], [1], [0, 1, 1, 1], [], []>, precision = #tpu.contract_precision<fp32>} : vector<16x16xf32>, vector<16x64xf32>, vector<16x64xf32> -> vector<16x64xf32>
    %c0_25 = arith.constant 0 : index
    %c0_26 = arith.constant 0 : index
    %33 = vector.load %arg8[%c0_25, %c0_26] : memref<64x2xf32, #tpu.memory_space<vmem>>, vector<64x2xf32>
    %cst_27 = arith.constant dense<0.000000e+00> : vector<2x16xf32>
    %34 = tpu.matmul %33, %32, %cst_27 {dimension_numbers = #tpu.dot_dimension_numbers<[0], [1], [1], [0], [0, 1, 1, 0], [], []>, precision = #tpu.contract_precision<fp32>} : vector<64x2xf32>, vector<16x64xf32>, vector<2x16xf32> -> vector<2x16xf32>
    %c0_28 = arith.constant 0 : index
    %c0_29 = arith.constant 0 : index
    %35 = vector.load %arg9[%c0_28, %c0_29] : memref<2x1xf32, #tpu.memory_space<vmem>>, vector<2x1xf32>
    %36 = vector.broadcast %35 : vector<2x1xf32> to vector<2x16xf32>
    %37 = arith.addf %34, %36 : vector<2x16xf32>
    %c0_30 = arith.constant 0 : index
    %c0_31 = arith.constant 0 : index
    %c0_32 = arith.constant 0 : index
    %38 = vector.load %arg10[%c0_30, %c0_31, %c0_32] : memref<1x2x16xf32, #tpu.memory_space<vmem>>, vector<1x2x16xf32>
    %39 = vector.shape_cast %38 : vector<1x2x16xf32> to vector<2x16xf32>
    %40 = vector.shape_cast %37 : vector<2x16xf32> to vector<1x2x16xf32>
    tpu.vector_store %arg10[%c0_30, %c0_31, %c0_32], %40 {strides = array<i32>} : memref<1x2x16xf32, #tpu.memory_space<vmem>>, vector<1x2x16xf32>,
    return
  }
  func.func @transform_0(%arg0: i32) -> (i32, i32) {
    %c0_i32 = arith.constant 0 : i32
    %c0_i32_0 = arith.constant 0 : i32
    return %arg0, %c0_i32 : i32, i32
  }
  func.func @transform_1(%arg0: i32) -> (i32, i32) {
    %c0_i32 = arith.constant 0 : i32
    %c0_i32_0 = arith.constant 0 : i32
    %c0_i32_1 = arith.constant 0 : i32
    return %c0_i32, %c0_i32_0 : i32, i32
  }
  func.func @transform_2(%arg0: i32) -> (i32, i32) {
    %c0_i32 = arith.constant 0 : i32
    %c0_i32_0 = arith.constant 0 : i32
    %c0_i32_1 = arith.constant 0 : i32
    return %c0_i32, %c0_i32_0 : i32, i32
  }
  func.func @transform_3(%arg0: i32) -> (i32, i32) {
    %c0_i32 = arith.constant 0 : i32
    %c0_i32_0 = arith.constant 0 : i32
    %c0_i32_1 = arith.constant 0 : i32
    return %c0_i32, %c0_i32_0 : i32, i32
  }
  func.func @transform_4(%arg0: i32) -> (i32, i32) {
    %c0_i32 = arith.constant 0 : i32
    %c0_i32_0 = arith.constant 0 : i32
    %c0_i32_1 = arith.constant 0 : i32
    return %c0_i32, %c0_i32_0 : i32, i32
  }
  func.func @transform_5(%arg0: i32) -> (i32, i32) {
    %c0_i32 = arith.constant 0 : i32
    %c0_i32_0 = arith.constant 0 : i32
    %c0_i32_1 = arith.constant 0 : i32
    return %c0_i32, %c0_i32_0 : i32, i32
  }
  func.func @transform_6(%arg0: i32) -> (i32, i32) {
    %c0_i32 = arith.constant 0 : i32
    %c0_i32_0 = arith.constant 0 : i32
    %c0_i32_1 = arith.constant 0 : i32
    return %c0_i32, %c0_i32_0 : i32, i32
  }
  func.func @transform_7(%arg0: i32) -> (i32, i32) {
    %c0_i32 = arith.constant 0 : i32
    %c0_i32_0 = arith.constant 0 : i32
    %c0_i32_1 = arith.constant 0 : i32
    return %c0_i32, %c0_i32_0 : i32, i32
  }
  func.func @transform_8(%arg0: i32) -> (i32, i32) {
    %c0_i32 = arith.constant 0 : i32
    %c0_i32_0 = arith.constant 0 : i32
    %c0_i32_1 = arith.constant 0 : i32
    return %c0_i32, %c0_i32_0 : i32, i32
  }
  func.func @transform_9(%arg0: i32) -> (i32, i32, i32) {
    %c0_i32 = arith.constant 0 : i32
    %c0_i32_0 = arith.constant 0 : i32
    %c0_i32_1 = arith.constant 0 : i32
    return %arg0, %c0_i32, %c0_i32_0 : i32, i32, i32
  }
  func.func @transform_10(%arg0: i32) -> (i32, i32, i32) {
    %c0_i32 = arith.constant 0 : i32
    %c0_i32_0 = arith.constant 0 : i32
    %c0_i32_1 = arith.constant 0 : i32
    return %arg0, %c0_i32, %c0_i32_0 : i32, i32, i32
  }
}

</mosaic_0001>

<bundles_post_ra>
// kernel: tpu_custom_call.1
= control target key start
LH: loop header
LB: loop body
LE: loop exit
PB: predicated region body
PF: predicated region fallthrough
CT: control target
= control target key end

     0   :  { %16 = vsyncpa [#allocation3], 0  ;;  %s5814_s0 = inlined_call_operand.vmem [shape: f32[16,32], index: 0, kind: input, shape index: {}]   ;;  %s5815_s1 = inlined_call_operand.hbm [shape: f32[16,16], index: 1, kind: input, shape index: {}]   ;;  %s5816_s2 = inlined_call_operand.hbm [shape: f32[16,16], index: 2, kind: input, shape index: {}]   ;;  %s5817_s3 = inlined_call_operand.hbm [shape: f32[32,64], index: 3, kind: input, shape index: {}]   ;;  %s5818_s4 = inlined_call_operand.vmem [shape: f32[1,64], index: 4, kind: input, shape index: {}]   ;;  %s5819_s5 = inlined_call_operand.vmem [shape: f32[64,64], index: 5, kind: input, shape index: {}]   ;;  %s5820_s6 = inlined_call_operand.hbm [shape: f32[64,64], index: 6, kind: input, shape index: {}]   ;;  %s5821_s7 = inlined_call_operand.vmem [shape: f32[64,2], index: 7, kind: input, shape index: {}]   ;;  %s5822_s8 = inlined_call_operand.vmem [shape: f32[2,1], index: 8, kind: input, shape index: {}]   ;;  %s5823_s9 = inlined_call_operand.hbm [shape: f32[1,2,16], index: 9, kind: output, shape index: {0}]   ;;  %s5824_s10 = inlined_call_operand.hbm [shape: f32[1,16,16], index: 10, kind: output, shape index: {1}]  }
   0x1   :  { %17 = vsyncpa [#allocation6], 0 }
   0x2   :  { %18 = vsyncpa [#allocation9], 0 }
   0x3   :  { %19 = vsyncpa [#allocation4], 0 }
   0x4   :  { %20 = vsyncpa [#allocation12], 0  ;;  %s5243_s13 = smov [#allocation5]   ;;  %s5244_s15 = smov [#allocation2]  }
   0x5   :  { %s40_s14 = sshll.u32 %s5243_s13, 4  ;;  %s28_s16 = sshll.u32 %s5244_s15, 4  ;;  %s41_s14 = int_to_ptr.vmem [resolvable:$true] %s40_s14  ;;  %s5310_s16 = int_to_ptr.vmem [resolvable:$true] %s28_s16 }
   0x6   :  { %s5101_s19 = scalar_lea.hbm %s5816_s2, 256 }
   0x7   :  { %p5102_p0 = scmp.ne.s32.totalorder %s5816_s2, %s5101_s19  ;;  %p5105_p1 = scmp.lt.u32.totalorder %s5101_s19, %s5816_s2 }
   0x9   :  { %p5107_p2 = pnand %p5105_p1, %p5102_p0 }
   0xb   :  { %5110 = shalt.err (!%p5107_p2)
}
   0xc   :  { %s5111_s24 = scalar_lea.vmem %s41_s14, 256  ;;  %p5116_p4 = scmp.lt.s32.totalorder %s41_s14, %s41_s14 }
   0xd   :  { %p5112_p3 = scmp.ne.s32.totalorder %s41_s14, %s5111_s24  ;;  %p5117_p5 = scmp.lt.s32.totalorder %s5111_s24, %s5111_s24 }
   0xf   :  { %p5118_p6 = por %p5117_p5, %p5116_p4 }
  0x11   :  { %p5119_p7 = pnand %p5118_p6, %p5112_p3 }
  0x13   :  { %5122 = shalt.err (!%p5119_p7)
}
  0x14   :  { %s5245_s25 = smov 128   ;;  %s5246_s26 = smov 8  }
  0x15   :  { %46 = dma.hbm_to_vmem [thread:$0]  %s5816_s2, 256, %s41_s14, [#allocation6], %s5245_s25, %s5245_s25, %s5246_s26  }
  0x16   :  { %s5123_s11 = scalar_lea.hbm %s5815_s1, 256 }
  0x17   :  { %p5124_p8 = scmp.ne.s32.totalorder %s5815_s1, %s5123_s11  ;;  %p5127_p9 = scmp.lt.u32.totalorder %s5123_s11, %s5815_s1 }
  0x19   :  { %p5129_p10 = pnand %p5127_p9, %p5124_p8 }
  0x1b   :  { %5132 = shalt.err (!%p5129_p10)
}
  0x1c   :  { %s5133_s18 = scalar_lea.vmem %s5310_s16, 256  ;;  %p5138_p12 = scmp.lt.s32.totalorder %s5310_s16, %s5310_s16 }
  0x1d   :  { %p5134_p11 = scmp.ne.s32.totalorder %s5310_s16, %s5133_s18  ;;  %p5139_p13 = scmp.lt.s32.totalorder %s5133_s18, %s5133_s18 }
  0x1f   :  { %p5140_p0 = por %p5139_p13, %p5138_p12 }
  0x21   :  { %p5141_p1 = pnand %p5140_p0, %p5134_p11 }
  0x23   :  { %5144 = shalt.err (!%p5141_p1)
}
  0x24   :  { %34 = dma.hbm_to_vmem [thread:$0]  %s5815_s1, 256, %s5310_s16, [#allocation3], %s5245_s25, %s5245_s25, %s5246_s26  }
  0x25   :  { %s5247_s19 = smov [#allocation7]   ;;  %s5248_s21 = smov [#allocation8]  }
  0x26   :  { %s52_s20 = sshll.u32 %s5247_s19, 4  ;;  %s68_s22 = sshll.u32 %s5248_s21, 4  ;;  %s53_s20 = int_to_ptr.vmem [resolvable:$true] %s52_s20  ;;  %s5347_s22 = int_to_ptr.vmem [resolvable:$true] %s68_s22 }
  0x27   :  { %s5145_s27 = scalar_lea.hbm %s5817_s3, 512 }
  0x28   :  { %p5146_p2 = scmp.ne.s32.totalorder %s5817_s3, %s5145_s27  ;;  %p5149_p3 = scmp.lt.u32.totalorder %s5145_s27, %s5817_s3 }
  0x2a   :  { %p5151_p4 = pnand %p5149_p3, %p5146_p2 }
  0x2c   :  { %5154 = shalt.err (!%p5151_p4)
}
  0x2d   :  { %s5155_s1 = scalar_lea.vmem %s53_s20, 512  ;;  %p5160_p6 = scmp.lt.s32.totalorder %s53_s20, %s53_s20 }
  0x2e   :  { %p5156_p5 = scmp.ne.s32.totalorder %s53_s20, %s5155_s1  ;;  %p5161_p7 = scmp.lt.s32.totalorder %s5155_s1, %s5155_s1 }
  0x30   :  { %p5162_p8 = por %p5161_p7, %p5160_p6 }
  0x32   :  { %p5163_p9 = pnand %p5162_p8, %p5156_p5 }
  0x34   :  { %5166 = shalt.err (!%p5163_p9)
}
  0x35   :  { %58 = dma.hbm_to_vmem [thread:$0]  %s5817_s3, 512, %s53_s20, [#allocation6], %s5245_s25, %s5245_s25, %s5246_s26  }
  0x36   :  { %s5167_s17 = scalar_lea.hbm %s5820_s6, 1024 }
  0x37   :  { %p5168_p10 = scmp.ne.s32.totalorder %s5820_s6, %s5167_s17  ;;  %p5171_p11 = scmp.lt.u32.totalorder %s5167_s17, %s5820_s6 }
  0x39   :  { %p5173_p12 = pnand %p5171_p11, %p5168_p10 }
  0x3b   :  { %5176 = shalt.err (!%p5173_p12)
}
  0x3c   :  { %s5177_s21 = scalar_lea.vmem %s5347_s22, 1024  ;;  %p5182_p0 = scmp.lt.s32.totalorder %s5347_s22, %s5347_s22 }
  0x3d   :  { %p5178_p13 = scmp.ne.s32.totalorder %s5347_s22, %s5177_s21  ;;  %p5183_p1 = scmp.lt.s32.totalorder %s5177_s21, %s5177_s21 }
  0x3f   :  { %p5184_p2 = por %p5183_p1, %p5182_p0 }
  0x41   :  { %p5185_p3 = pnand %p5184_p2, %p5178_p13 }
  0x43   :  { %5188 = shalt.err (!%p5185_p3)
}
  0x44   :  { %74 = dma.hbm_to_vmem [thread:$0]  %s5820_s6, 1024, %s5347_s22, [#allocation9], %s5245_s25, %s5245_s25, %s5246_s26  }
  0x45   :  { %5233 = dma.done.wait [#allocation3], 256  }
  0x46   :  { %5234 = vsyncadd [#allocation3], 4294967040 }
  0x47   :  { %5235 = dma.done.wait [#allocation6], 768  }
  0x48   :  { %5236 = vsyncadd [#allocation6], 4294966528 }
  0x49   :  { %5237 = dma.done.wait [#allocation9], 1024  }
  0x4a   :  { %5238 = vsyncadd [#allocation9], 4294966272  ;;  %vm104_vm0 = vcmask 261120   ;;  %v93_v0 = vld [vmem:[#allocation7] sm:$0xff]  ;;  %v94_v1 = vld [vmem:[#allocation7 + $0x8] sm:$0xff]  ;;  %vm643_vm1 = vcmask 130048  }
  0x4b   :  { %v95_v2 = vld [vmem:[#allocation7 + $0x10] sm:$0xff]  ;;  %v112_v3 = vand.u32 4294901760, %v93_v0  ;;  %v115_v4 = vand.u32 4294901760, %v94_v1  ;;  %v96_v5 = vld [vmem:[#allocation7 + $0x18] sm:$0xff]  ;;  %v91_v7 = vld [vmem:[%s5814_s0] sm:$0xff]  ;;  %vm1160_vm2 = vcmask 523264  }
  0x4c   :  { %v118_v6 = vand.u32 4294901760, %v95_v2  ;;  %v92_v8 = vld [vmem:[%s5814_s0 + $0x8] sm:$0xff]  ;;  %v121_v9 = vand.u32 4294901760, %v96_v5  ;;  %v106_v10 = vsel %vm104_vm0, %v91_v7, 0  ;;  %v641_v46 = vld [vmem:[#allocation2] sm:$0xff]  ;;  %vm5250_vm3 = vmmov 0  }
  0x4d   :  { %v109_v11 = vsel %vm104_vm0, %v92_v8, 0  ;;  %v5390_v12 = vpack.c.bf16 %v115_v4, %v112_v3  ;;  %v5392_v13 = vand.u32 4294901760, %v106_v10  ;;  %v202_v15 = vsub.f32 %v93_v0, %v112_v3  ;;  %v642_v53 = vld [vmem:[#allocation2 + $0x8] sm:$0xff]  ;;  %v3966_v56 = vld [vmem:[%s5818_s4] ss:$0 sm:$0xff] }
  0x4e   :  { %v5394_v14 = vand.u32 4294901760, %v109_v11  ;;  %v5396_v16 = vpack.c.bf16 %v121_v9, %v118_v6  ;;  %v209_v17 = vsub.f32 %v94_v1, %v115_v4  ;;  %v216_v18 = vsub.f32 %v95_v2, %v118_v6 }
  0x4f   :  { %v223_v19 = vsub.f32 %v96_v5, %v121_v9  ;;  %4676 = vmatprep.subr.bf16.mxu0 %v5390_v12  ;;  %v181_v20 = vsub.f32 %v106_v10, %v5392_v13  ;;  %v203_v22 = vand.u32 4294901760, %v202_v15  ;;  %v645_v47 = vsel %vm643_vm1, %v641_v46, 0 }
  0x50   :  { %v191_v21 = vsub.f32 %v109_v11, %v5394_v14  ;;  %4678 = vmatpush3.bf16.msra.mxu0 %v5390_v12  ;;  %v210_v23 = vand.u32 4294901760, %v209_v17  ;;  %v217_v24 = vand.u32 4294901760, %v216_v18  ;;  %v4691_v42 = vpack.c.bf16 %v209_v17, %v202_v15 }
  0x51   :  { %v224_v25 = vand.u32 4294901760, %v223_v19  ;;  %4680 = vmatprep.subr.bf16.mxu0 %v5396_v16  ;;  %v182_v26 = vand.u32 4294901760, %v181_v20  ;;  %v204_v28 = vsub.f32 %v202_v15, %v203_v22  ;;  %v4695_v43 = vpack.c.bf16 %v223_v19, %v216_v18 }
  0x52   :  { %v192_v27 = vand.u32 4294901760, %v191_v21  ;;  %v211_v29 = vsub.f32 %v209_v17, %v210_v23  ;;  %v218_v30 = vsub.f32 %v216_v18, %v217_v24  ;;  %v4707_v44 = vpack.c.bf16 %v210_v23, %v203_v22 }
  0x53   :  { %v225_v31 = vsub.f32 %v223_v19, %v224_v25  ;;  %v183_v32 = vsub.f32 %v181_v20, %v182_v26  ;;  %v205_v34 = vand.u32 4294901760, %v204_v28  ;;  %v4711_v45 = vpack.c.bf16 %v224_v25, %v217_v24  ;;  %v1152_v19 = vld [vmem:[%s5819_s5] sm:$0xff] }
  0x54   :  { %v193_v33 = vsub.f32 %v191_v21, %v192_v27  ;;  %4682 = vmatpush3.bf16.msra.mxu0 %v5396_v16  ;;  %v212_v35 = vand.u32 4294901760, %v211_v29  ;;  %v219_v36 = vand.u32 4294901760, %v218_v30  ;;  %v5419_v48 = vand.u32 4294901760, %v645_v47 }
  0x55   :  { %v226_v37 = vand.u32 4294901760, %v225_v31  ;;  %v184_v38 = vand.u32 4294901760, %v183_v32  ;;  %v648_v54 = vsel %vm643_vm1, %v642_v53, 0 }
  0x56   :  { %v194_v39 = vand.u32 4294901760, %v193_v33  ;;  %v4683_v40 = vpack.c.bf16 %v212_v35, %v205_v34  ;;  %v718_v49 = vsub.f32 %v645_v47, %v5419_v48  ;;  %v5423_v55 = vand.u32 4294901760, %v648_v54  ;;  %v1156_v34 = vld [vmem:[%s5819_s5 + $0x20] sm:$0xff]  ;;  %v1157_v35 = vld [vmem:[%s5819_s5 + $0x28] sm:$0xff] }
  0x57   :  { %v4687_v41 = vpack.c.bf16 %v226_v37, %v219_v36  ;;  %4221 = vmatprep.mubr.f32.mxu0 %v184_v38  ;;  %v1158_v37 = vld [vmem:[%s5819_s5 + $0x30] sm:$0xff]  ;;  %v1159_v38 = vld [vmem:[%s5819_s5 + $0x38] sm:$0xff] }
  0x58   :  { %4222 = vmatmul.mubr.f32.vlgmr.msra.gmra.mrb[0].mxu0 %v194_v39  ;;  %4684 = vmatprep.subr.bf16.mxu0 %v4683_v40  ;;  %v719_v50 = vand.u32 4294901760, %v718_v49  ;;  %v728_v57 = vsub.f32 %v648_v54, %v5423_v55  ;;  %v1186_v47 = vand.u32 4294901760, %v1158_v37 }
  0x59   :  { %4686 = vmatpush3.bf16.msra.mxu0 %v4683_v40  ;;  %4232 = vmatprep.mubr.f32.mxu0 %v5392_v13 }
  0x5a   :  { %4688 = vmatprep.subr.bf16.mxu0 %v4687_v41  ;;  %v720_v51 = vsub.f32 %v718_v49, %v719_v50  ;;  %v729_v62 = vand.u32 4294901760, %v728_v57 }
  0x5c   :  { %v721_v52 = vand.u32 4294901760, %v720_v51  ;;  %v730_v3 = vsub.f32 %v728_v57, %v729_v62 }
  0x5d   :  { %4690 = vmatpush3.bf16.msra.mxu0 %v4687_v41 }
  0x5e   :  { %4692 = vmatprep.subr.bf16.mxu0 %v4691_v42  ;;  %4283 = vmatprep.mubr.f32.mxu1 %v721_v52  ;;  %v731_v8 = vand.u32 4294901760, %v730_v3 }
  0x60   :  { %4233 = vmatmul.mubr.f32.vlgmr.msra.gmra.mrb[0].mxu0 %v5394_v14 }
  0x61   :  { %4694 = vmatpush3.bf16.msra.mxu0 %v4691_v42  ;;  %4243 = vmatprep.mubr.f32.mxu0 %v181_v20  ;;  %v1153_v20 = vld [vmem:[%s5819_s5 + $0x8] sm:$0xff] }
  0x62   :  { %4696 = vmatprep.subr.bf16.mxu0 %v4695_v43  ;;  %v1171_v22 = vand.u32 4294901760, %v1153_v20 }
  0x64   :  { %v5457_v29 = vsub.f32 %v1153_v20, %v1171_v22 }
  0x65   :  { %4698 = vmatpush3.bf16.msra.mxu0 %v4695_v43 }
  0x66   :  { %4700 = vmatprep.subr.bf16.mxu0 %v5390_v12  ;;  %v1270_v39 = vand.u32 4294901760, %v5457_v29 }
  0x68   :  { %4244 = vmatmul.mubr.f32.vlgmr.msra.gmra.mrb[0].mxu0 %v191_v21  ;;  %v1168_v21 = vand.u32 4294901760, %v1152_v19 }
  0x69   :  { %4702 = vmatpush3.bf16.msra.mxu0 %v5390_v12  ;;  %4254 = vmatprep.mubr.f32.mxu0 %v182_v26  ;;  %v1154_v26 = vld [vmem:[%s5819_s5 + $0x10] sm:$0xff] }
  0x6a   :  { %4704 = vmatprep.subr.bf16.mxu0 %v5396_v16  ;;  %v5444_v24 = vpack.c.bf16 %v1171_v22, %v1168_v21  ;;  %v5454_v28 = vsub.f32 %v1152_v19, %v1168_v21  ;;  %v1174_v30 = vand.u32 4294901760, %v1154_v26 }
  0x6c   :  { %v1263_v36 = vand.u32 4294901760, %v5454_v28  ;;  %v5478_v40 = vsub.f32 %v1154_v26, %v1174_v30  ;;  %v4779_v22 = vpack.c.bf16 %v5457_v29, %v5454_v28 }
  0x6d   :  { %4706 = vmatpush3.bf16.msra.mxu0 %v5396_v16 }
  0x6e   :  { %4708 = vmatprep.subr.bf16.mxu0 %v4707_v44  ;;  %v1277_v51 = vand.u32 4294901760, %v5478_v40 }
  0x70   :  { %4255 = vmatmul.mubr.f32.vlgmr.msra.gmra.mrb[0].mxu0 %v192_v27  ;;  %v1155_v27 = vld [vmem:[%s5819_s5 + $0x18] sm:$0xff] }
  0x71   :  { %4710 = vmatpush3.bf16.msra.mxu0 %v4707_v44  ;;  %4265 = vmatprep.mubr.f32.mxu0 %v5392_v13  ;;  %v1177_v31 = vand.u32 4294901760, %v1155_v27  ;;  %v1180_v44 = vand.u32 4294901760, %v1156_v34 }
  0x72   :  { %4712 = vmatprep.subr.bf16.mxu0 %v4711_v45 }
  0x73   :  { %v5480_v41 = vsub.f32 %v1155_v27, %v1177_v31  ;;  %v5484_v43 = vpack.c.bf16 %v1177_v31, %v1174_v30  ;;  %v5496_v53 = vsub.f32 %v1156_v34, %v1180_v44  ;;  %v4811_v31 = vpack.c.bf16 %v1270_v39, %v1263_v36 }
  0x75   :  { %4714 = vmatpush3.bf16.msra.mxu0 %v4711_v45  ;;  %v1183_v45 = vand.u32 4294901760, %v1157_v35  ;;  %v1284_v52 = vand.u32 4294901760, %v5480_v41  ;;  %v4783_v26 = vpack.c.bf16 %v5480_v41, %v5478_v40 }
  0x76   :  { %4716 = vmatprep.subr.bf16.mxu0 %v5390_v12 }
  0x78   :  { %4266 = vmatmul.mubr.f32.vlgmr.msra.gmra.mrb[0].mxu0 %v5394_v14 }
  0x79   :  { %4718 = vmatpush3.bf16.msra.mxu0 %v5390_v12  ;;  %4276 = vmatprep.mubr.f32.mxu0 %v5392_v13 }
  0x7a   :  { %4720 = vmatprep.subr.bf16.mxu0 %v5396_v16 }
  0x7d   :  { %4722 = vmatpush3.bf16.msra.mxu0 %v5396_v16 }
  0x80   :  { %4277 = vmatmul.mubr.f32.vlgmr.msra.gmra.mrb[0].mxu0 %v5394_v14 }
 0x153   :  { %v4278_v58 = vpop.f32.mrb[0].mxu0 }
 0x154   :  { %v5005_v59 = vadd.f32 %v4278_v58, %v3966_v56  ;;  %v629_v60 = vpop.f32.mrb[1].mxu0 }
 0x155   :  { %v5006_v61 = vadd.f32 %v3966_v56, %v629_v60  ;;  %v5504_v56 = vsub.f32 %v1157_v35, %v1183_v45  ;;  %v1278_v60 = vsub.f32 %v5478_v40, %v1277_v51 }
 0x156   :  { %v640_v63 = vmax.f32 %v5005_v59, 0.0 }
 0x157   :  { %v639_v0 = vmax.f32 %v5006_v61, 0.0  ;;  %v1285_v61 = vsub.f32 %v5480_v41, %v1284_v52  ;;  %v4787_v27 = vpack.c.bf16 %v5504_v56, %v5496_v53 }
 0x158   :  { %v654_v1 = vand.u32 4294901760, %v640_v63  ;;  %v1165_v32 = vsel %vm1160_vm2, %v640_v63, 0 }
 0x159   :  { %v651_v2 = vand.u32 4294901760, %v639_v0  ;;  %v1162_v17 = vsel %vm1160_vm2, %v639_v0, 0  ;;  %v5482_v42 = vand.u32 4294901760, %v1165_v32 }
 0x15a   :  { %v746_v4 = vsub.f32 %v640_v63, %v654_v1  ;;  %v5432_v18 = vand.u32 4294901760, %v1162_v17 }
 0x15b   :  { %v4723_v5 = vpack.c.bf16 %v654_v1, %v651_v2  ;;  %v739_v6 = vsub.f32 %v639_v0, %v651_v2  ;;  %v5499_v54 = vsub.f32 %v1165_v32, %v5482_v42  ;;  %v1298_v0 = vand.u32 4294901760, %v5504_v56 }
 0x15c   :  { %v747_v7 = vand.u32 4294901760, %v746_v4  ;;  %v5442_v23 = vsub.f32 %v1162_v17, %v5432_v18  ;;  %v5519_v1 = vsub.f32 %v1158_v37, %v1186_v47 }
 0x15d   :  { %4724 = vmatprep.subr.bf16.mxu1 %v4723_v5  ;;  %v740_v9 = vand.u32 4294901760, %v739_v6  ;;  %v4731_v10 = vpack.c.bf16 %v746_v4, %v739_v6  ;;  %v1252_v63 = vand.u32 4294901760, %v5499_v54 }
 0x15e   :  { %4726 = vmatpush3.bf16.msra.mxu1 %v4723_v5  ;;  %v748_v11 = vsub.f32 %v746_v4, %v747_v7  ;;  %v1242_v25 = vand.u32 4294901760, %v5442_v23  ;;  %v1279_v4 = vand.u32 4294901760, %v1278_v60 }
 0x15f   :  { %v741_v12 = vsub.f32 %v739_v6, %v740_v9  ;;  %v4739_v13 = vpack.c.bf16 %v747_v7, %v740_v9  ;;  %v1253_v7 = vsub.f32 %v5499_v54, %v1252_v63  ;;  %v1305_v9 = vand.u32 4294901760, %v5519_v1 }
 0x160   :  { %v749_v14 = vand.u32 4294901760, %v748_v11  ;;  %v1243_v33 = vsub.f32 %v5442_v23, %v1242_v25 }
 0x161   :  { %4284 = vmatmul.mubr.f32.vlgmr.msra.gmra.mrb[0].mxu1 %v731_v8  ;;  %v742_v15 = vand.u32 4294901760, %v741_v12  ;;  %v1299_v8 = vsub.f32 %v5504_v56, %v1298_v0 }
 0x162   :  { %4290 = vmatprep.mubr.f32.mxu1 %v5419_v48  ;;  %v1244_v46 = vand.u32 4294901760, %v1243_v33 }
 0x163   :  { %v4727_v16 = vpack.c.bf16 %v749_v14, %v742_v15  ;;  %v1300_v14 = vand.u32 4294901760, %v1299_v8  ;;  %v1306_v15 = vsub.f32 %v5519_v1, %v1305_v9  ;;  %v2293_v8 = vld [vmem:[#allocation8 + $0x20] sm:$0xff] }
 0x165   :  { %4728 = vmatprep.subr.bf16.mxu1 %v4727_v16  ;;  %v1307_v19 = vand.u32 4294901760, %v1306_v15 }
 0x166   :  { %4730 = vmatpush3.bf16.msra.mxu1 %v4727_v16 }
 0x167   :  { %4732 = vmatprep.subr.bf16.mxu1 %v4731_v10 }
 0x169   :  { %4291 = vmatmul.mubr.f32.vlgmr.msra.gmra.mrb[0].mxu1 %v5423_v55 }
 0x16a   :  { %4734 = vmatpush3.bf16.msra.mxu1 %v4731_v10  ;;  %4297 = vmatprep.mubr.f32.mxu1 %v718_v49  ;;  %v1264_v49 = vsub.f32 %v5454_v28, %v1263_v36 }
 0x16b   :  { %4736 = vmatprep.subr.bf16.mxu1 %v4723_v5 }
 0x16c   :  { %v1265_v58 = vand.u32 4294901760, %v1264_v49 }
 0x171   :  { %4298 = vmatmul.mubr.f32.vlgmr.msra.gmra.mrb[0].mxu1 %v728_v57 }
 0x172   :  { %4738 = vmatpush3.bf16.msra.mxu1 %v4723_v5  ;;  %4304 = vmatprep.mubr.f32.mxu1 %v719_v50  ;;  %v1271_v50 = vsub.f32 %v5457_v29, %v1270_v39 }
 0x173   :  { %4740 = vmatprep.subr.bf16.mxu1 %v4739_v13 }
 0x174   :  { %v1272_v59 = vand.u32 4294901760, %v1271_v50 }
 0x176   :  { %v4763_v3 = vpack.c.bf16 %v1272_v59, %v1265_v58 }
 0x179   :  { %4305 = vmatmul.mubr.f32.vlgmr.msra.gmra.mrb[0].mxu1 %v729_v62  ;;  %v1291_v62 = vand.u32 4294901760, %v5496_v53 }
 0x17a   :  { %4742 = vmatpush3.bf16.msra.mxu1 %v4739_v13  ;;  %4311 = vmatprep.mubr.f32.mxu1 %v5419_v48  ;;  %v1254_v13 = vand.u32 4294901760, %v1253_v7 }
 0x17b   :  { %4744 = vmatprep.subr.bf16.mxu1 %v4723_v5  ;;  %v1292_v6 = vsub.f32 %v5496_v53, %v1291_v62 }
 0x17d   :  { %v1293_v12 = vand.u32 4294901760, %v1292_v6 }
 0x17f   :  { %v4771_v17 = vpack.c.bf16 %v1300_v14, %v1293_v12 }
 0x181   :  { %4312 = vmatmul.mubr.f32.vlgmr.msra.gmra.mrb[0].mxu1 %v5423_v55 }
 0x182   :  { %4746 = vmatpush3.bf16.msra.mxu1 %v4723_v5  ;;  %4318 = vmatprep.mubr.f32.mxu1 %v5419_v48  ;;  %v1189_v48 = vand.u32 4294901760, %v1159_v38  ;;  %v1286_v5 = vand.u32 4294901760, %v1285_v61  ;;  %v2289_v61 = vld [vmem:[#allocation8] sm:$0xff] }
 0x183   :  { %4748 = vmatprep.subr.bf16.mxu1 %v5444_v24 }
 0x184   :  { %v5506_v57 = vpack.c.bf16 %v1189_v48, %v1186_v47  ;;  %v5521_v2 = vsub.f32 %v1159_v38, %v1189_v48  ;;  %v4767_v11 = vpack.c.bf16 %v1286_v5, %v1279_v4 }
 0x186   :  { %v1312_v10 = vand.u32 4294901760, %v5521_v2  ;;  %v4791_v30 = vpack.c.bf16 %v5521_v2, %v5519_v1 }
 0x188   :  { %v1313_v16 = vsub.f32 %v5521_v2, %v1312_v10  ;;  %v4823_v28 = vpack.c.bf16 %v1312_v10, %v1305_v9  ;;  %v2291_v2 = vld [vmem:[#allocation8 + $0x10] sm:$0xff]  ;;  %v2294_v9 = vld [vmem:[#allocation8 + $0x28] sm:$0xff] }
 0x189   :  { %4319 = vmatmul.mubr.f32.vlgmr.msra.gmra.mrb[0].mxu1 %v5423_v55  ;;  %v5502_v55 = vpack.c.bf16 %v1183_v45, %v1180_v44  ;;  %v2304_v6 = vand.u32 4294901760, %v2291_v2  ;;  %v2295_v10 = vld [vmem:[#allocation8 + $0x30] sm:$0xff] }
 0x18a   :  { %4750 = vmatpush3.bf16.msra.mxu1 %v5444_v24  ;;  %4337 = vmatprep.mubr.f32.mxu1 %v1244_v46  ;;  %v1314_v20 = vand.u32 4294901760, %v1313_v16 }
 0x18b   :  { %4752 = vmatprep.subr.bf16.mxu1 %v5484_v43  ;;  %v5628_v14 = vsub.f32 %v2291_v2, %v2304_v6  ;;  %v1748_v2 = vld [vmem:[#allocation5 + $0x8] sm:$0xff] }
 0x18c   :  { %v4775_v21 = vpack.c.bf16 %v1314_v20, %v1307_v19  ;;  %v2313_v19 = vand.u32 4294901760, %v2294_v9  ;;  %v2316_v20 = vand.u32 4294901760, %v2295_v10 }
 0x18e   :  { %4754 = vmatpush3.bf16.msra.mxu1 %v5484_v43 }
 0x18f   :  { %4756 = vmatprep.subr.bf16.mxu1 %v5502_v55 }
 0x192   :  { %4758 = vmatpush3.bf16.msra.mxu1 %v5502_v55 }
 0x193   :  { %4760 = vmatprep.subr.bf16.mxu1 %v5506_v57 }
 0x196   :  { %4762 = vmatpush3.bf16.msra.mxu1 %v5506_v57 }
 0x197   :  { %4764 = vmatprep.subr.bf16.mxu1 %v4763_v3 }
 0x199   :  { %4338 = vmatmul.mubr.f32.vlgmr.msra.gmra.mrb[2].mxu1 %v1254_v13 }
 0x19a   :  { %4766 = vmatpush3.bf16.msra.mxu1 %v4763_v3  ;;  %4356 = vmatprep.mubr.f32.mxu1 %v5432_v18  ;;  %v2292_v3 = vld [vmem:[#allocation8 + $0x18] sm:$0xff] }
 0x19b   :  { %4768 = vmatprep.subr.bf16.mxu1 %v4767_v11  ;;  %v2307_v7 = vand.u32 4294901760, %v2292_v3 }
 0x19d   :  { %v5630_v15 = vsub.f32 %v2292_v3, %v2307_v7  ;;  %v5632_v16 = vpack.c.bf16 %v2307_v7, %v2304_v6 }
 0x19e   :  { %4770 = vmatpush3.bf16.msra.mxu1 %v4767_v11  ;;  %v2296_v11 = vld [vmem:[#allocation8 + $0x38] sm:$0xff] }
 0x19f   :  { %4772 = vmatprep.subr.bf16.mxu1 %v4771_v17 }
 0x1a2   :  { %4774 = vmatpush3.bf16.msra.mxu1 %v4771_v17  ;;  %v2310_v17 = vand.u32 4294901760, %v2293_v8 }
 0x1a3   :  { %4776 = vmatprep.subr.bf16.mxu1 %v4775_v21 }
 0x1a6   :  { %4778 = vmatpush3.bf16.msra.mxu1 %v4775_v21  ;;  %v2319_v21 = vand.u32 4294901760, %v2296_v11 }
 0x1a7   :  { %4780 = vmatprep.subr.bf16.mxu1 %v4779_v22 }
 0x1a9   :  { %4357 = vmatmul.mubr.f32.vlgmr.msra.gmra.mrb[2].mxu1 %v5482_v42 }
 0x1aa   :  { %4782 = vmatpush3.bf16.msra.mxu1 %v4779_v22  ;;  %4375 = vmatprep.mubr.f32.mxu1 %v5442_v23  ;;  %v4815_v23 = vpack.c.bf16 %v1284_v52, %v1277_v51 }
 0x1ab   :  { %4784 = vmatprep.subr.bf16.mxu1 %v4783_v26 }
 0x1ae   :  { %4786 = vmatpush3.bf16.msra.mxu1 %v4783_v26 }
 0x1af   :  { %4788 = vmatprep.subr.bf16.mxu1 %v4787_v27 }
 0x1b2   :  { %4790 = vmatpush3.bf16.msra.mxu1 %v4787_v27  ;;  %v2407_v27 = vand.u32 4294901760, %v5628_v14 }
 0x1b3   :  { %4792 = vmatprep.subr.bf16.mxu1 %v4791_v30 }
 0x1b6   :  { %4794 = vmatpush3.bf16.msra.mxu1 %v4791_v30  ;;  %v2414_v30 = vand.u32 4294901760, %v5630_v15 }
 0x1b7   :  { %4796 = vmatprep.subr.bf16.mxu1 %v5444_v24 }
 0x1b9   :  { %4376 = vmatmul.mubr.f32.vlgmr.msra.gmra.mrb[2].mxu1 %v5499_v54 }
 0x1ba   :  { %4798 = vmatpush3.bf16.msra.mxu1 %v5444_v24  ;;  %4394 = vmatprep.mubr.f32.mxu1 %v1242_v25  ;;  %v4819_v25 = vpack.c.bf16 %v1298_v0, %v1291_v62  ;;  %v2290_v62 = vld [vmem:[#allocation8 + $0x8] sm:$0xff] }
 0x1bb   :  { %4800 = vmatprep.subr.bf16.mxu1 %v5484_v43  ;;  %v2301_v0 = vand.u32 4294901760, %v2290_v62 }
 0x1bd   :  { %v5623_v5 = vsub.f32 %v2290_v62, %v2301_v0 }
 0x1be   :  { %4802 = vmatpush3.bf16.msra.mxu1 %v5484_v43 }
 0x1bf   :  { %4804 = vmatprep.subr.bf16.mxu1 %v5502_v55  ;;  %v2400_v13 = vand.u32 4294901760, %v5623_v5 }
 0x1c1   :  { %v2401_v26 = vsub.f32 %v5623_v5, %v2400_v13 }
 0x1c2   :  { %4806 = vmatpush3.bf16.msra.mxu1 %v5502_v55 }
 0x1c3   :  { %4808 = vmatprep.subr.bf16.mxu1 %v5506_v57 }
 0x1c6   :  { %4810 = vmatpush3.bf16.msra.mxu1 %v5506_v57 }
 0x1c7   :  { %4812 = vmatprep.subr.bf16.mxu1 %v4811_v31 }
 0x1c9   :  { %4395 = vmatmul.mubr.f32.vlgmr.msra.gmra.mrb[2].mxu1 %v1252_v63  ;;  %v2298_v63 = vand.u32 4294901760, %v2289_v61 }
 0x1ca   :  { %4814 = vmatpush3.bf16.msra.mxu1 %v4811_v31  ;;  %4413 = vmatprep.mubr.f32.mxu1 %v5432_v18  ;;  %v5645_v31 = vpack.c.bf16 %v2313_v19, %v2310_v17 }
 0x1cb   :  { %4816 = vmatprep.subr.bf16.mxu1 %v4815_v23  ;;  %v5619_v1 = vpack.c.bf16 %v2301_v0, %v2298_v63  ;;  %v5621_v4 = vsub.f32 %v2289_v61, %v2298_v63 }
 0x1cd   :  { %v2393_v12 = vand.u32 4294901760, %v5621_v4 }
 0x1ce   :  { %4818 = vmatpush3.bf16.msra.mxu1 %v4815_v23  ;;  %v5647_v23 = vsub.f32 %v2293_v8, %v2310_v17 }
 0x1cf   :  { %4820 = vmatprep.subr.bf16.mxu1 %v4819_v25  ;;  %v2394_v22 = vsub.f32 %v5621_v4, %v2393_v12 }
 0x1d2   :  { %4822 = vmatpush3.bf16.msra.mxu1 %v4819_v25  ;;  %v5649_v25 = vsub.f32 %v2294_v9, %v2313_v19 }
 0x1d3   :  { %4824 = vmatprep.subr.bf16.mxu1 %v4823_v28 }
 0x1d4   :  { %v4907_v61 = vpack.c.bf16 %v5649_v25, %v5647_v23 }
 0x1d6   :  { %4826 = vmatpush3.bf16.msra.mxu1 %v4823_v28  ;;  %v5651_v28 = vpack.c.bf16 %v2319_v21, %v2316_v20 }
 0x1d7   :  { %4828 = vmatprep.subr.bf16.mxu1 %v5444_v24 }
 0x1d9   :  { %4414 = vmatmul.mubr.f32.vlgmr.msra.gmra.mrb[2].mxu1 %v5482_v42 }
 0x1da   :  { %4830 = vmatpush3.bf16.msra.mxu1 %v5444_v24  ;;  %4432 = vmatprep.mubr.f32.mxu1 %v5432_v18 }
 0x1db   :  { %4832 = vmatprep.subr.bf16.mxu1 %v5484_v43 }
 0x1de   :  { %4834 = vmatpush3.bf16.msra.mxu1 %v5484_v43 }
 0x1df   :  { %4836 = vmatprep.subr.bf16.mxu1 %v5502_v55 }
 0x1e2   :  { %4838 = vmatpush3.bf16.msra.mxu1 %v5502_v55 }
 0x1e3   :  { %4840 = vmatprep.subr.bf16.mxu1 %v5506_v57 }
 0x1e6   :  { %4842 = vmatpush3.bf16.msra.mxu1 %v5506_v57 }
 0x1e9   :  { %4433 = vmatmul.mubr.f32.vlgmr.msra.gmra.mrb[2].mxu1 %v5482_v42 }
 0x25c   :  { %v4320_v29 = vpop.f32.mrb[0].mxu1 }
 0x25d   :  { %v1759_v32 = vsel %vm1160_vm2, %v4320_v29, 0  ;;  %v1142_v24 = vpop.f32.mrb[1].mxu1  ;;  %v2395_v29 = vand.u32 4294901760, %v2394_v22 }
 0x25e   :  { %v5584_v33 = vand.u32 4294901760, %v1759_v32  ;;  %v1756_v18 = vsel %vm1160_vm2, %v1142_v24, 0  ;;  %v2408_v24 = vsub.f32 %v5628_v14, %v2407_v27 }
 0x25f   :  { %v5587_v34 = vand.u32 4294901760, %v1756_v18 }
 0x260   :  { %v5590_v35 = vsub.f32 %v1759_v32, %v5584_v33  ;;  %v2402_v32 = vand.u32 4294901760, %v2401_v26 }
 0x261   :  { %v4843_v36 = vpack.c.bf16 %v5584_v33, %v5587_v34  ;;  %v5595_v37 = vsub.f32 %v1756_v18, %v5587_v34  ;;  %v2415_v18 = vsub.f32 %v5630_v15, %v2414_v30 }
 0x262   :  { %v5598_v38 = vand.u32 4294901760, %v5590_v35 }
 0x263   :  { %v5601_v39 = vand.u32 4294901760, %v5595_v37  ;;  %4844 = vmatprep.subr.bf16.mxu0 %v4843_v36  ;;  %v4851_v59 = vpack.c.bf16 %v5590_v35, %v5595_v37 }
 0x264   :  { %4846 = vmatpush3.bf16.xpose.msra.mxu0 %v4843_v36  ;;  %v1859_v40 = vsub.f32 %v5590_v35, %v5598_v38 }
 0x265   :  { %v1852_v41 = vsub.f32 %v5595_v37, %v5601_v39  ;;  %v4859_v60 = vpack.c.bf16 %v5598_v38, %v5601_v39 }
 0x266   :  { %v5607_v42 = vand.u32 4294901760, %v1859_v40  ;;  %v2428_v40 = vand.u32 4294901760, %v5649_v25 }
 0x267   :  { %v5609_v43 = vand.u32 4294901760, %v1852_v41  ;;  %v5663_v41 = vsub.f32 %v2295_v10, %v2316_v20 }
 0x269   :  { %v4847_v44 = vpack.c.bf16 %v5607_v42, %v5609_v43 }
 0x26b   :  { %4848 = vmatprep.subr.bf16.mxu0 %v4847_v44 }
 0x2bc   :  { %v4434_v45 = vpop.f32.mrb[2].mxu1 }
 0x2bd   :  { %v1753_v46 = vsel %vm1160_vm2, %v4434_v45, 0  ;;  %v1737_v47 = vpop.f32.mrb[3].mxu1  ;;  %v2409_v45 = vand.u32 4294901760, %v2408_v24 }
 0x2be   :  { %v1838_v48 = vand.u32 4294901760, %v1753_v46  ;;  %v1750_v49 = vsel %vm1160_vm2, %v1737_v47, 0 }
 0x2bf   :  { %v1828_v50 = vand.u32 4294901760, %v1750_v49 }
 0x2c0   :  { %v1839_v51 = vsub.f32 %v1753_v46, %v1838_v48  ;;  %v2416_v46 = vand.u32 4294901760, %v2415_v18 }
 0x2c1   :  { %v1829_v52 = vsub.f32 %v1750_v49, %v1828_v50  ;;  %v2435_v49 = vand.u32 4294901760, %v5663_v41 }
 0x2c2   :  { %v1840_v53 = vand.u32 4294901760, %v1839_v51 }
 0x2c3   :  { %v1830_v54 = vand.u32 4294901760, %v1829_v52 }
 0x2c4   :  { %v1841_v55 = vsub.f32 %v1839_v51, %v1840_v53 }
 0x2c5   :  { %v1831_v56 = vsub.f32 %v1829_v52, %v1830_v54 }
 0x2c6   :  { %v1842_v58 = vand.u32 4294901760, %v1841_v55 }
 0x2c7   :  { %v1832_v57 = vand.u32 4294901760, %v1831_v56 }
 0x2c9   :  { %4439 = vmatprep.mubr.f32.mxu0 %v1832_v57 }
 0x2ca   :  { %4440 = vmatmul.mubr.f32.vlgmr.msra.gmra.mrb[2].mxu0 %v1842_v58 }
 0x2cb   :  { %4850 = vmatpush3.bf16.xpose.msra.mxu0 %v4847_v44  ;;  %4446 = vmatprep.mubr.f32.mxu0 %v1828_v50  ;;  %v4883_v44 = vpack.c.bf16 %v2402_v32, %v2395_v29 }
 0x2cc   :  { %4852 = vmatprep.subr.bf16.mxu0 %v4851_v59 }
 0x2d2   :  { %4447 = vmatmul.mubr.f32.vlgmr.msra.gmra.mrb[2].mxu0 %v1838_v48 }
 0x2d3   :  { %4854 = vmatpush3.bf16.xpose.msra.mxu0 %v4851_v59  ;;  %4453 = vmatprep.mubr.f32.mxu0 %v1829_v52 }
 0x2d4   :  { %4856 = vmatprep.subr.bf16.mxu0 %v4843_v36 }
 0x2da   :  { %4454 = vmatmul.mubr.f32.vlgmr.msra.gmra.mrb[2].mxu0 %v1839_v51  ;;  %v4887_v51 = vpack.c.bf16 %v2416_v46, %v2409_v45  ;;  %v3417_v46 = vld [vmem:[%s5821_s7] sm:$0xff] }
 0x2db   :  { %4858 = vmatpush3.bf16.xpose.msra.mxu0 %v4843_v36  ;;  %4460 = vmatprep.mubr.f32.mxu0 %v1830_v54  ;;  %v2436_v54 = vsub.f32 %v5663_v41, %v2435_v49 }
 0x2dc   :  { %4860 = vmatprep.subr.bf16.mxu0 %v4859_v60 }
 0x2dd   :  { %v2437_v57 = vand.u32 4294901760, %v2436_v54 }
 0x2e2   :  { %4461 = vmatmul.mubr.f32.vlgmr.msra.gmra.mrb[2].mxu0 %v1840_v53 }
 0x2e3   :  { %4862 = vmatpush3.bf16.xpose.msra.mxu0 %v4859_v60  ;;  %4467 = vmatprep.mubr.f32.mxu0 %v1828_v50  ;;  %v4899_v60 = vpack.c.bf16 %v5623_v5, %v5621_v4 }
 0x2e4   :  { %4864 = vmatprep.subr.bf16.mxu0 %v4843_v36 }
 0x2ea   :  { %4468 = vmatmul.mubr.f32.vlgmr.msra.gmra.mrb[2].mxu0 %v1838_v48 }
 0x2eb   :  { %4866 = vmatpush3.bf16.xpose.msra.mxu0 %v4843_v36  ;;  %4474 = vmatprep.mubr.f32.mxu0 %v1828_v50  ;;  %v2421_v36 = vand.u32 4294901760, %v5647_v23 }
 0x2ec   :  { %4868 = vmatprep.subr.bf16.mxu0 %v5619_v1 }
 0x2ed   :  { %v2422_v47 = vsub.f32 %v5647_v23, %v2421_v36 }
 0x2ef   :  { %v2423_v52 = vand.u32 4294901760, %v2422_v47  ;;  %v3418_v47 = vld [vmem:[%s5821_s7 + $0x8] sm:$0xff] }
 0x2f2   :  { %4475 = vmatmul.mubr.f32.vlgmr.msra.gmra.mrb[2].mxu0 %v1838_v48  ;;  %v2429_v48 = vsub.f32 %v5649_v25, %v2428_v40 }
 0x2f3   :  { %4870 = vmatpush3.bf16.msra.mxu0 %v5619_v1  ;;  %4493 = vmatprep.mubr.f32.mxu0 %v5609_v43  ;;  %v5665_v43 = vsub.f32 %v2296_v11, %v2319_v21 }
 0x2f4   :  { %4872 = vmatprep.subr.bf16.mxu0 %v5632_v16  ;;  %v2430_v53 = vand.u32 4294901760, %v2429_v48  ;;  %v3419_v48 = vld [vmem:[%s5821_s7 + $0x10] sm:$0xff] }
 0x2f5   :  { %v2442_v50 = vand.u32 4294901760, %v5665_v43  ;;  %v4911_v62 = vpack.c.bf16 %v5665_v43, %v5663_v41 }
 0x2f6   :  { %v4891_v56 = vpack.c.bf16 %v2430_v53, %v2423_v52  ;;  %v3423_v52 = vld [vmem:[%s5821_s7 + $0x30] sm:$0xff]  ;;  %v3424_v53 = vld [vmem:[%s5821_s7 + $0x38] sm:$0xff] }
 0x2f7   :  { %4874 = vmatpush3.bf16.msra.mxu0 %v5632_v16  ;;  %v2443_v55 = vsub.f32 %v5665_v43, %v2442_v50  ;;  %v4943_v63 = vpack.c.bf16 %v2442_v50, %v2435_v49  ;;  %v3420_v49 = vld [vmem:[%s5821_s7 + $0x18] sm:$0xff]  ;;  %v3421_v50 = vld [vmem:[%s5821_s7 + $0x20] sm:$0xff] }
 0x2f8   :  { %4876 = vmatprep.subr.bf16.mxu0 %v5645_v31 }
 0x2f9   :  { %v2444_v58 = vand.u32 4294901760, %v2443_v55 }
 0x2fb   :  { %4878 = vmatpush3.bf16.msra.mxu0 %v5645_v31  ;;  %v4895_v59 = vpack.c.bf16 %v2444_v58, %v2437_v57 }
 0x2fc   :  { %4880 = vmatprep.subr.bf16.mxu0 %v5651_v28 }
 0x2ff   :  { %4882 = vmatpush3.bf16.msra.mxu0 %v5651_v28 }
 0x300   :  { %4884 = vmatprep.subr.bf16.mxu0 %v4883_v44 }
 0x302   :  { %4494 = vmatmul.mubr.f32.vlgmr.msra.gmra.mrb[4].mxu0 %v5607_v42  ;;  %v4903_v42 = vpack.c.bf16 %v5630_v15, %v5628_v14 }
 0x303   :  { %4886 = vmatpush3.bf16.msra.mxu0 %v4883_v44  ;;  %4512 = vmatprep.mubr.f32.mxu0 %v5587_v34 }
 0x304   :  { %4888 = vmatprep.subr.bf16.mxu0 %v4887_v51 }
 0x307   :  { %4890 = vmatpush3.bf16.msra.mxu0 %v4887_v51  ;;  %v3422_v51 = vld [vmem:[%s5821_s7 + $0x28] sm:$0xff] }
 0x308   :  { %4892 = vmatprep.subr.bf16.mxu0 %v4891_v56 }
 0x30b   :  { %4894 = vmatpush3.bf16.msra.mxu0 %v4891_v56 }
 0x30c   :  { %4896 = vmatprep.subr.bf16.mxu0 %v4895_v59 }
 0x30f   :  { %4898 = vmatpush3.bf16.msra.mxu0 %v4895_v59 }
 0x310   :  { %4900 = vmatprep.subr.bf16.mxu0 %v4899_v60 }
 0x312   :  { %4513 = vmatmul.mubr.f32.vlgmr.msra.gmra.mrb[4].mxu0 %v5584_v33 }
 0x313   :  { %4902 = vmatpush3.bf16.msra.mxu0 %v4899_v60  ;;  %4531 = vmatprep.mubr.f32.mxu0 %v5595_v37  ;;  %v4931_v37 = vpack.c.bf16 %v2400_v13, %v2393_v12 }
 0x314   :  { %4904 = vmatprep.subr.bf16.mxu0 %v4903_v42 }
 0x317   :  { %4906 = vmatpush3.bf16.msra.mxu0 %v4903_v42 }
 0x318   :  { %4908 = vmatprep.subr.bf16.mxu0 %v4907_v61 }
 0x31b   :  { %4910 = vmatpush3.bf16.msra.mxu0 %v4907_v61 }
 0x31c   :  { %4912 = vmatprep.subr.bf16.mxu0 %v4911_v62 }
 0x31f   :  { %4914 = vmatpush3.bf16.msra.mxu0 %v4911_v62 }
 0x320   :  { %4916 = vmatprep.subr.bf16.mxu0 %v5619_v1 }
 0x322   :  { %4532 = vmatmul.mubr.f32.vlgmr.msra.gmra.mrb[4].mxu0 %v5590_v35  ;;  %v4935_v35 = vpack.c.bf16 %v2414_v30, %v2407_v27 }
 0x323   :  { %4918 = vmatpush3.bf16.msra.mxu0 %v5619_v1  ;;  %4550 = vmatprep.mubr.f32.mxu0 %v5601_v39  ;;  %v4939_v39 = vpack.c.bf16 %v2428_v40, %v2421_v36 }
 0x324   :  { %4920 = vmatprep.subr.bf16.mxu0 %v5632_v16 }
 0x327   :  { %4922 = vmatpush3.bf16.msra.mxu0 %v5632_v16 }
 0x328   :  { %4924 = vmatprep.subr.bf16.mxu0 %v5645_v31 }
 0x32b   :  { %4926 = vmatpush3.bf16.msra.mxu0 %v5645_v31 }
 0x32c   :  { %4928 = vmatprep.subr.bf16.mxu0 %v5651_v28 }
 0x32f   :  { %4930 = vmatpush3.bf16.msra.mxu0 %v5651_v28 }
 0x330   :  { %4932 = vmatprep.subr.bf16.mxu0 %v4931_v37 }
 0x332   :  { %4551 = vmatmul.mubr.f32.vlgmr.msra.gmra.mrb[4].mxu0 %v5598_v38  ;;  %v1747_v38 = vld [vmem:[#allocation5] sm:$0xff] }
 0x333   :  { %4934 = vmatpush3.bf16.msra.mxu0 %v4931_v37  ;;  %4569 = vmatprep.mubr.f32.mxu0 %v5587_v34 }
 0x334   :  { %4936 = vmatprep.subr.bf16.mxu0 %v4935_v35 }
 0x337   :  { %4938 = vmatpush3.bf16.msra.mxu0 %v4935_v35 }
 0x338   :  { %4940 = vmatprep.subr.bf16.mxu0 %v4939_v39 }
 0x33b   :  { %4942 = vmatpush3.bf16.msra.mxu0 %v4939_v39 }
 0x33c   :  { %4944 = vmatprep.subr.bf16.mxu0 %v4943_v63 }
 0x33f   :  { %4946 = vmatpush3.bf16.msra.mxu0 %v4943_v63 }
 0x340   :  { %4948 = vmatprep.subr.bf16.mxu0 %v5619_v1 }
 0x342   :  { %4570 = vmatmul.mubr.f32.vlgmr.msra.gmra.mrb[4].mxu0 %v5584_v33 }
 0x343   :  { %4950 = vmatpush3.bf16.msra.mxu0 %v5619_v1  ;;  %4588 = vmatprep.mubr.f32.mxu0 %v5587_v34 }
 0x344   :  { %4952 = vmatprep.subr.bf16.mxu0 %v5632_v16 }
 0x347   :  { %4954 = vmatpush3.bf16.msra.mxu0 %v5632_v16 }
 0x348   :  { %4956 = vmatprep.subr.bf16.mxu0 %v5645_v31 }
 0x34b   :  { %4958 = vmatpush3.bf16.msra.mxu0 %v5645_v31 }
 0x34c   :  { %4960 = vmatprep.subr.bf16.mxu0 %v5651_v28 }
 0x34f   :  { %4962 = vmatpush3.bf16.msra.mxu0 %v5651_v28 }
 0x352   :  { %4589 = vmatmul.mubr.f32.vlgmr.msra.gmra.mrb[4].mxu0 %v5584_v33 }
 0x3c5   :  { %v4476_v0 = vpop.f32.mrb[2].mxu0 }
 0x3c6   :  { %v2253_v1 = vpop.f32.mrb[3].mxu0  ;;  %v5007_v34 = vadd.f32 %v4476_v0, %v1748_v2  ;;  %v5251_v0 = vmov 0.0   ;;  %v3425_v2 = vld [vmem:[%s5822_s8] sm:$0x3]  ;;  %s5253_s8 = smov [#allocation11]  }
 0x3c7   :  { %v5008_v3 = vadd.f32 %v2253_v1, %v1747_v38  ;;  %v5249_v38 = vmov 0.0|0.0   ;;  %v5252_v1 = vmov 0   ;;  %s3948_s13 = sshll.u32 %s5253_s8, 4  ;;  %s3949_s13 = int_to_ptr.vmem [resolvable:$true] %s3948_s13 }
 0x3c8   :  { %v2266_v5 = vsel %vm643_vm1, %v5007_v34, -inf  ;;  %s5189_s15 = scalar_lea.vmem %s3949_s13, 256  ;;  %p5194_p5 = scmp.lt.s32.totalorder %s3949_s13, %s3949_s13 }
 0x3c9   :  { %v2263_v4 = vsel %vm643_vm1, %v5008_v3, -inf  ;;  %p5190_p4 = scmp.ne.s32.totalorder %s3949_s13, %s5189_s15  ;;  %p5195_p6 = scmp.lt.s32.totalorder %s5189_s15, %s5189_s15 }
 0x3ca   :  { %2264 = vmax.xlane.f32.xlu0 %v2263_v4 }
 0x3cb   :  { %p5196_p7 = por %p5195_p6, %p5194_p5 }
 0x3cd   :  { %p5197_p8 = pnand %p5196_p7, %p5190_p4 }
 0x3ce   :  { %2267 = vmax.xlane.f32.xlu0 %v2266_v5 }
 0x425   :  { %v4590_v6 = vpop.f32.mrb[4].mxu0 }
 0x426   :  { %v2919_v7 = vand.u32 4294901760, %v4590_v6  ;;  %v2867_v8 = vpop.f32.mrb[5].mxu0 }
 0x427   :  { %v2916_v9 = vand.u32 4294901760, %v2867_v8 }
 0x428   :  { %v3011_v10 = vsub.f32 %v4590_v6, %v2919_v7 }
 0x429   :  { %v5729_v11 = vpack.c.bf16 %v2919_v7, %v2916_v9  ;;  %v3004_v33 = vsub.f32 %v2867_v8, %v2916_v9 }
 0x42a   :  { %v3012_v12 = vand.u32 4294901760, %v3011_v10 }
 0x42b   :  { %v3005_v13 = vand.u32 4294901760, %v3004_v33  ;;  %4964 = vmatprep.subr.bf16.mxu1 %v5729_v11  ;;  %v5732_v14 = vpack.c.bf16 %v3011_v10, %v3004_v33 }
 0x42c   :  { %v3013_v15 = vsub.f32 %v3011_v10, %v3012_v12  ;;  %4966 = vmatpush3.bf16.msra.mxu1 %v5729_v11 }
 0x42d   :  { %v3006_v16 = vsub.f32 %v3004_v33, %v3005_v13  ;;  %v5735_v17 = vpack.c.bf16 %v3012_v12, %v3005_v13 }
 0x42e   :  { %v3014_v19 = vand.u32 4294901760, %v3013_v15 }
 0x42f   :  { %v3007_v20 = vand.u32 4294901760, %v3006_v16 }
 0x431   :  { %v4967_v21 = vpack.c.bf16 %v3014_v19, %v3007_v20 }
 0x433   :  { %4968 = vmatprep.subr.bf16.mxu1 %v4967_v21 }
 0x457   :  { %v2265_v22 = vpop.xlane.xlu0 %2264 }
 0x458   :  { %v2269_v26 = vsub.f32 %v5008_v3, %v2265_v22 }
 0x45a   :  { %v2271_v27 = vmul.f32 1.442695, %v2269_v26 }
 0x45b   :  { %v2268_v30 = vpop.xlane.xlu0 %2267 }
 0x45c   :  { %5093 = vpow2.f32 %v2271_v27  ;;  %v2270_v31 = vsub.f32 %v5007_v34, %v2268_v30 }
 0x45e   :  { %v2273_v23 = vmul.f32 1.442695, %v2270_v31 }
 0x460   :  { %5095 = vpow2.f32 %v2273_v23 }
 0x466   :  { %v5094_v25 = vpop.eup %5093 }
 0x467   :  { %v2275_v28 = vsel %vm643_vm1, %v5094_v25, 0.0 }
 0x468   :  { %2276 = vadd.xlane.f32.xlu1 %v2275_v28 }
 0x46a   :  { %v5096_v29 = vpop.eup %5095 }
 0x46b   :  { %v2278_v32 = vsel %vm643_vm1, %v5096_v29, 0.0 }
 0x46c   :  { %2279 = vadd.xlane.f32.xlu1 %v2278_v32 }
 0x49f   :  { %3431 = vxpose.xlu1.b32.start [1/8] (short) (narrow) %v3417_v46, 8 }
 0x4a3   :  { %3432 = vxpose.xlu1.b32.cont [2/8] (short) (narrow) %v3418_v47, 8 }
 0x4a7   :  { %3433 = vxpose.xlu1.b32.cont [3/8] (short) (narrow) %v3419_v48, 8 }
 0x4ab   :  { %3434 = vxpose.xlu1.b32.cont [4/8] (short) (narrow) %v3420_v49, 8 }
 0x4af   :  { %3435 = vxpose.xlu1.b32.cont [5/8] (short) (narrow) %v3421_v50, 8 }
 0x4b3   :  { %3436 = vxpose.xlu1.b32.cont [6/8] (short) (narrow) %v3422_v51, 8 }
 0x4b7   :  { %3437 = vxpose.xlu1.b32.cont [7/8] (short) (narrow) %v3423_v52, 8 }
 0x4bb   :  { %3438 = vxpose.xlu1.b32.end [8/8] (short) (narrow) %v3424_v53, 8 }
 0x4f5   :  { %v2277_v24 = vpop.xlane.xlu1 %2276 }
 0x4f6   :  { %5097 = vrcp.f32 %v2277_v24 }
 0x4f9   :  { %v2280_v18 = vpop.xlane.xlu1 %2279 }
 0x4fa   :  { %5099 = vrcp.f32 %v2280_v18 }
 0x500   :  { %v5098_v36 = vpop.eup %5097 }
 0x501   :  { %v2283_v40 = vmul.f32 0.125, %v5098_v36 }
 0x503   :  { %v2285_v41 = vmul.f32 %v5094_v25, %v2283_v40 }
 0x504   :  { %v5100_v43 = vpop.eup %5099 }
 0x505   :  { %v2284_v44 = vmul.f32 0.125, %v5100_v43  ;;  %2877 = vxpose.xlu0.b32.start [1/2] (short) (narrow) %v2285_v41, 16  ;;  %2287 = vst.msk [vmem:[#allocation11] sm:$0xff] %vm643_vm1, %v2285_v41 }
 0x507   :  { %v2286_v45 = vmul.f32 %v5096_v29, %v2284_v44 }
 0x509   :  { %2878 = vxpose.xlu0.b32.end [2/2] (short) (narrow) %v2286_v45, 16  ;;  %2288 = vst.msk [vmem:[#allocation11 + $0x8] sm:$0xff] %vm643_vm1, %v2286_v45 }
 0x51f   :  { %v3447_v3 = vpop.trf.xlu1 }
 0x520   :  { %v3464_v34 = vsel %vm1160_vm2, %v3447_v3, 0 }
 0x521   :  { %v3539_v4 = vand.u32 4294901760, %v3464_v34 }
 0x523   :  { %v3540_v6 = vsub.f32 %v3464_v34, %v3539_v4 }
 0x525   :  { %v3541_v12 = vand.u32 4294901760, %v3540_v6 }
 0x527   :  { %v3542_v20 = vsub.f32 %v3540_v6, %v3541_v12 }
 0x529   :  { %v3543_v30 = vand.u32 4294901760, %v3542_v20 }
 0x532   :  { %5092 = vset.pattern.permute.xlu0 %v5252_v1 }
 0x533   :  { %3428 = vperm.xlu0 %5092, %v3425_v2  }
 0x585   :  { %v2893_v54 = vpop.trf.xlu0 }
 0x586   :  { %v2910_v55 = vsel %vm643_vm1, %v2893_v54, 0 }
 0x587   :  { %v2982_v56 = vand.u32 4294901760, %v2910_v55 }
 0x589   :  { %v2983_v57 = vsub.f32 %v2910_v55, %v2982_v56  ;;  %v2894_v58 = vpop.trf.xlu0 }
 0x58a   :  { %v2913_v59 = vsel %vm643_vm1, %v2894_v58, 0 }
 0x58b   :  { %v2984_v60 = vand.u32 4294901760, %v2983_v57  ;;  %v2992_v42 = vand.u32 4294901760, %v2913_v59 }
 0x58d   :  { %v2993_v61 = vsub.f32 %v2913_v59, %v2992_v42  ;;  %v2985_v62 = vsub.f32 %v2983_v57, %v2984_v60 }
 0x58f   :  { %v2994_v37 = vand.u32 4294901760, %v2993_v61  ;;  %v2986_v35 = vand.u32 4294901760, %v2985_v62 }
 0x591   :  { %v2995_v39 = vsub.f32 %v2993_v61, %v2994_v37  ;;  %4595 = vmatprep.mubr.f32.mxu1 %v2986_v35 }
 0x593   :  { %v2996_v63 = vand.u32 4294901760, %v2995_v39 }
 0x595   :  { %4596 = vmatmul.mubr.f32.vlgmr.msra.gmra.mrb[4].mxu1 %v2996_v63 }
 0x596   :  { %4970 = vmatpush3.bf16.msra.mxu1 %v4967_v21  ;;  %4602 = vmatprep.mubr.f32.mxu1 %v2982_v56 }
 0x597   :  { %4972 = vmatprep.subr.bf16.mxu1 %v5732_v14 }
 0x59d   :  { %4603 = vmatmul.mubr.f32.vlgmr.msra.gmra.mrb[4].mxu1 %v2992_v42 }
 0x59e   :  { %4974 = vmatpush3.bf16.msra.mxu1 %v5732_v14  ;;  %4609 = vmatprep.mubr.f32.mxu1 %v2983_v57 }
 0x59f   :  { %4976 = vmatprep.subr.bf16.mxu1 %v5729_v11 }
 0x5a5   :  { %4610 = vmatmul.mubr.f32.vlgmr.msra.gmra.mrb[4].mxu1 %v2993_v61 }
 0x5a6   :  { %4978 = vmatpush3.bf16.msra.mxu1 %v5729_v11  ;;  %4616 = vmatprep.mubr.f32.mxu1 %v2984_v60 }
 0x5a7   :  { %4980 = vmatprep.subr.bf16.mxu1 %v5735_v17 }
 0x5ad   :  { %4617 = vmatmul.mubr.f32.vlgmr.msra.gmra.mrb[4].mxu1 %v2994_v37 }
 0x5ae   :  { %4982 = vmatpush3.bf16.msra.mxu1 %v5735_v17  ;;  %4623 = vmatprep.mubr.f32.mxu1 %v2982_v56 }
 0x5af   :  { %4984 = vmatprep.subr.bf16.mxu1 %v5729_v11 }
 0x5b5   :  { %4624 = vmatmul.mubr.f32.vlgmr.msra.gmra.mrb[4].mxu1 %v2992_v42 }
 0x5b6   :  { %4986 = vmatpush3.bf16.msra.mxu1 %v5729_v11  ;;  %4630 = vmatprep.mubr.f32.mxu1 %v2982_v56 }
 0x5b7   :  { %4987 = vmatprep.subr.bf16.mxu1 %v5249_v38 }
 0x5bd   :  { %4631 = vmatmul.mubr.f32.vlgmr.msra.gmra.mrb[4].mxu1 %v2992_v42 }
 0x5be   :  { %4637 = vmatprep.mubr.msk.f32.mxu1 %vm5250_vm3, %v5251_v0 }
 0x690   :  { %v4632_v5 = vpop.f32.mrb[4].mxu1 }
 0x691   :  { %v3470_v7 = vsel %vm1160_vm2, %v4632_v5, 0  ;;  %v3407_v8 = vpop.f32.mrb[5].mxu1 }
 0x692   :  { %v3476_v9 = vand.u32 4294901760, %v3470_v7  ;;  %v3467_v10 = vsel %vm1160_vm2, %v3407_v8, 0 }
 0x693   :  { %v3473_v11 = vand.u32 4294901760, %v3467_v10 }
 0x694   :  { %v3558_v33 = vsub.f32 %v3470_v7, %v3476_v9 }
 0x695   :  { %v4988_v13 = vpack.c.bf16 %v3476_v9, %v3473_v11  ;;  %v3551_v14 = vsub.f32 %v3467_v10, %v3473_v11 }
 0x696   :  { %v3559_v15 = vand.u32 4294901760, %v3558_v33 }
 0x697   :  { %v3552_v16 = vand.u32 4294901760, %v3551_v14  ;;  %v4994_v17 = vpack.c.bf16 %v3558_v33, %v3551_v14  ;;  %4989 = vmatpush3.bf16.xpose.msra.mxu1 %v4988_v13 }
 0x698   :  { %v3560_v19 = vsub.f32 %v3558_v33, %v3559_v15  ;;  %4990 = vmatprep.subr.bf16.mxu1 %v5249_v38 }
 0x699   :  { %v3553_v21 = vsub.f32 %v3551_v14, %v3552_v16  ;;  %v5000_v22 = vpack.c.bf16 %v3559_v15, %v3552_v16 }
 0x69a   :  { %v3561_v26 = vand.u32 4294901760, %v3560_v19 }
 0x69b   :  { %v3554_v27 = vand.u32 4294901760, %v3553_v21 }
 0x69d   :  { %v4991_v31 = vpack.c.bf16 %v3561_v26, %v3554_v27 }
 0x69e   :  { %4638 = vmatmul.mubr.f32.vlgmr.msra.gmra.mrb[6].mxu1 %v3543_v30 }
 0x69f   :  { %4992 = vmatpush3.bf16.xpose.msra.mxu1 %v4991_v31  ;;  %4644 = vmatprep.mubr.msk.f32.mxu1 %vm5250_vm3, %v5251_v0 }
 0x6a0   :  { %4993 = vmatprep.subr.bf16.mxu1 %v5249_v38 }
 0x6a6   :  { %4645 = vmatmul.mubr.f32.vlgmr.msra.gmra.mrb[6].mxu1 %v3539_v4 }
 0x6a7   :  { %4995 = vmatpush3.bf16.xpose.msra.mxu1 %v4994_v17  ;;  %4651 = vmatprep.mubr.msk.f32.mxu1 %vm5250_vm3, %v5251_v0 }
 0x6a8   :  { %4996 = vmatprep.subr.bf16.mxu1 %v5249_v38 }
 0x6ae   :  { %4652 = vmatmul.mubr.f32.vlgmr.msra.gmra.mrb[6].mxu1 %v3540_v6 }
 0x6af   :  { %4998 = vmatpush3.bf16.xpose.msra.mxu1 %v4988_v13  ;;  %4658 = vmatprep.mubr.msk.f32.mxu1 %vm5250_vm3, %v5251_v0 }
 0x6b0   :  { %4999 = vmatprep.subr.bf16.mxu1 %v5249_v38 }
 0x6b6   :  { %4659 = vmatmul.mubr.f32.vlgmr.msra.gmra.mrb[6].mxu1 %v3541_v12 }
 0x6b7   :  { %5001 = vmatpush3.bf16.xpose.msra.mxu1 %v5000_v22  ;;  %4665 = vmatprep.mubr.msk.f32.mxu1 %vm5250_vm3, %v5251_v0 }
 0x6b8   :  { %5002 = vmatprep.subr.bf16.mxu1 %v5249_v38 }
 0x6be   :  { %4666 = vmatmul.mubr.f32.vlgmr.msra.gmra.mrb[6].mxu1 %v3539_v4 }
 0x6bf   :  { %5004 = vmatpush3.bf16.xpose.msra.mxu1 %v4988_v13  ;;  %4672 = vmatprep.mubr.msk.f32.mxu1 %vm5250_vm3, %v5251_v0 }
 0x6c6   :  { %4673 = vmatmul.mubr.f32.vlgmr.msra.gmra.mrb[6].mxu1 %v3539_v4 }
 0x6c7   :  { %5200 = shalt.err (!%p5197_p8)
}
 0x6c8   :  { %s5201_s2 = scalar_lea.hbm %s5824_s10, 256 }
 0x6c9   :  { %p5202_p9 = scmp.ne.s32.totalorder %s5824_s10, %s5201_s2  ;;  %p5205_p10 = scmp.lt.u32.totalorder %s5201_s2, %s5824_s10 }
 0x6cb   :  { %p5207_p11 = pnand %p5205_p10, %p5202_p9 }
 0x6cd   :  { %5210 = shalt.err (!%p5207_p11)
}
 0x6ce   :  { %3954 = dma.vmem_to_hbm [thread:$0]  %s3949_s13, 256, %s5824_s10, [#allocation12], %s5245_s25, %s5245_s25, %s5246_s26   ;;  %v3429_v23 = vpop.permute.xlu0 %3428  ;;  %vm3931_vm4 = vcmask 123904  }
 0x6cf   :  { %s5254_s23 = smov [#allocation10]  }
 0x6d0   :  { %s3939_s24 = sshll.u32 %s5254_s23, 4  ;;  %s3940_s24 = int_to_ptr.vmem [resolvable:$true] %s3939_s24 }
 0x6d1   :  { %s5211_s27 = scalar_lea.vmem %s3940_s24, 32  ;;  %p5216_p13 = scmp.lt.s32.totalorder %s3940_s24, %s3940_s24 }
 0x6d2   :  { %p5212_p12 = scmp.ne.s32.totalorder %s3940_s24, %s5211_s27  ;;  %p5217_p0 = scmp.lt.s32.totalorder %s5211_s27, %s5211_s27 }
 0x6d4   :  { %p5218_p1 = por %p5217_p0, %p5216_p13 }
 0x6d6   :  { %p5219_p2 = pnand %p5218_p1, %p5212_p12 }
 0x799   :  { %v3927_v25 = vpop.f32.mrb[6].mxu1 }
 0x79a   :  { %v5009_v28 = vadd.f32 %v3927_v25, %v3429_v23  ;;  %v4674_v29 = vpop.f32.mrb[7].mxu1 }
 0x79c   :  { %3932 = vst.msk [vmem:[#allocation10] sm:$0x3] %vm3931_vm4, %v5009_v28 }
 0x79d   :  { %5222 = shalt.err (!%p5219_p2)
}
 0x79e   :  { %s5223_s10 = scalar_lea.hbm %s5823_s9, 32 }
 0x79f   :  { %p5224_p3 = scmp.ne.s32.totalorder %s5823_s9, %s5223_s10  ;;  %p5227_p4 = scmp.lt.u32.totalorder %s5223_s10, %s5823_s9 }
 0x7a1   :  { %p5229_p5 = pnand %p5227_p4, %p5224_p3 }
 0x7a3   :  { %5232 = shalt.err (!%p5229_p5)
}
 0x7a4   :  { %3942 = dma.vmem_to_hbm [thread:$0]  %s3940_s24, 32, %s5823_s9, [#allocation4]  }
 0x7a5   :  { %5239 = dma.done.wait [#allocation4], 32  }
 0x7a6   :  { %5240 = vsyncadd [#allocation4], 4294967264 }
 0x7a7   :  { %5241 = dma.done.wait [#allocation12], 256  }
 0x7a8   :  { %5242 = vsyncadd [#allocation12], 4294967040 }
 0x7a9   :  { %3961 = vsyncpa [#allocation3], 1 }
 0x7aa   :  { %3962 = vsyncpa [#allocation6], 1 }
 0x7ab   :  { %3963 = vsyncpa [#allocation9], 1 }
 0x7ac   :  { %3964 = vsyncpa [#allocation4], 1 }
 0x7ad   :  { %3965 = vsyncpa [#allocation12], 1 }

</bundles_post_ra>
